<compile_context>
chip_gen: v6e
topology: v6e:2x2x1
jax: 0.10.0
libtpu: 0.0.40
codegen_flags: <defaults>
</compile_context>

<pallas_src>
import jax
import jax.numpy as jnp
import numpy as np
from jax.experimental import pallas as pl
from jax.experimental.pallas import tpu as pltpu

EPS = 1e-5


def encoder_block_kernel(xh_ref, a1_ref, a2_ref, gb1_ref, gb2_ref,
                         r_ref, rt_ref, se_ref, so_ref, out_ref, ypad_ref):
    B, Hp, WCin = xh_ref.shape
    H = Hp - 2
    WC = a1_ref.shape[2]                       # W * Cout (lane-dense minor dim)
    Cout = gb1_ref.shape[1]
    inv_n = 1.0 / (B * H * (WC // Cout))       # 1 / (B*H*W) samples per channel

    def conv3x3(src_ref, a_ref, k_in):
        # 3 bf16 MXU matmuls (one per ky); kx taps + width zero-padding are folded
        # into the (k_in, WC) band matrices, so no per-tap activation slicing on W.
        acc = jnp.zeros((B * H, WC), jnp.float32)
        for ky in range(3):
            xs = src_ref[:, ky:ky + H, :].reshape(B * H, k_in)     # bf16 operand
            acc = acc + jnp.dot(xs, a_ref[ky],
                                preferred_element_type=jnp.float32)
        return acc

    def bn_relu(acc, gb_ref):
        # One-pass train-mode batch stats (biased variance).  Per-channel reduce /
        # broadcast between the (w*Cout+c) lane layout and (Cout,) uses tiny 0/1
        # matmuls (MXU is otherwise idle here).
        cs = jnp.sum(acc, axis=0, keepdims=True)                   # (1, WC)
        css = jnp.sum(acc * acc, axis=0, keepdims=True)            # (1, WC)
        red = jnp.dot(jnp.concatenate([cs, css], axis=0), r_ref[...],
                      preferred_element_type=jnp.float32)          # (2, Cout)
        mean = red[0:1] * inv_n
        var = red[1:2] * inv_n - mean * mean
        scale = gb_ref[0:1] * jax.lax.rsqrt(var + EPS)             # gamma * rsqrt
        shift = gb_ref[1:2] - mean * scale                         # beta - mean*scale
        ssb = jnp.dot(jnp.concatenate([scale, shift], axis=0), rt_ref[...],
                      preferred_element_type=jnp.float32)          # (2, WC)
        return jnp.maximum(acc * ssb[0:1] + ssb[1:2], 0.0)

    # ---- conv1 + BN + ReLU (conv bias omitted: exact no-op under train-mode BN) --
    y1 = bn_relu(conv3x3(xh_ref, a1_ref, WCin), gb1_ref)

    # ---- H-pad y1 into bf16 scratch with a single full store (no redundant zero) -
    zrow = jnp.zeros((B, 1, WC), jnp.float32)
    ypad_ref[...] = jnp.concatenate(
        [zrow, y1.reshape(B, H, WC), zrow], axis=1).astype(jnp.bfloat16)

    # ---- conv2 + BN + ReLU ----
    y2 = bn_relu(conv3x3(ypad_ref, a2_ref, WC), gb2_ref)

    # ---- 2x2 / stride-2 max pool ----
    # H direction: pair adjacent rows (last-dim-preserving reshape, no transpose).
    t = y2.reshape(B * H // 2, 2, WC)
    th = jnp.maximum(t[:, 0, :], t[:, 1, :])                       # (B*H/2, WC)
    # W direction: even/odd lane-block selection via two tiny 0/1 matmuls.
    ev = jnp.dot(th, se_ref[...], preferred_element_type=jnp.float32)
    od = jnp.dot(th, so_ref[...], preferred_element_type=jnp.float32)
    out_ref[...] = jnp.maximum(ev, od).astype(out_ref.dtype)


def _conv_band(w, W):
    """OIHW 3x3 weight (Cout, Cin, 3, 3) -> (3, W*Cin, W*Cout) band matrices.

    band[ky, wi*Cin+ci, wo*Cout+co] = w[co, ci, ky, wi-wo+1] when |wi-wo| <= 1 else 0,
    i.e. the kx taps, channel mixing and width zero-padding of a "same" 3x3 conv
    expressed as one matmul along K per ky tap.
    """
    Cout, Cin = int(w.shape[0]), int(w.shape[1])
    wi = jnp.arange(W)[:, None]                 # input column index
    wo = jnp.arange(W)[None, :]                 # output column index
    kx = wi - wo + 1                            # tap index, valid in [0, 2]
    valid = ((kx >= 0) & (kx <= 2)).astype(w.dtype)
    kxc = jnp.clip(kx, 0, 2)
    wt = jnp.transpose(w, (2, 3, 1, 0))         # (ky, kx, Cin, Cout)
    a = wt[:, kxc] * valid[None, :, :, None, None]      # (3, Wi, Wo, Cin, Cout)
    a = jnp.transpose(a, (0, 1, 3, 2, 4))               # (3, Wi, Cin, Wo, Cout)
    return a.reshape(3, W * Cin, W * Cout)


def encoder_block_pallas(x_nchw, p):
    """x_nchw: (B, Cin, H, W) f32 -> (B, Cout, H//2, W//2) f32 (train-mode BN)."""
    B, Cin, H, W = x_nchw.shape
    Cout = int(p["w1"].shape[0])
    assert H % 2 == 0 and W % 2 == 0
    WC = W * Cout

    # Glue (plain JAX): NCHW -> (B, H+2, W*Cin) with H-only zero pad (the width pad
    # is folded into the band matrices); bf16 MXU operands.
    x = jnp.transpose(x_nchw, (0, 2, 3, 1)).astype(jnp.float32)
    xh = jnp.pad(x, ((0, 0), (1, 1), (0, 0), (0, 0))).reshape(B, H + 2, W * Cin)
    xh = xh.astype(jnp.bfloat16)

    a1 = _conv_band(p["w1"], W).astype(jnp.bfloat16)      # (3, W*Cin,  W*Cout)
    a2 = _conv_band(p["w2"], W).astype(jnp.bfloat16)      # (3, W*Cout, W*Cout)

    gb1 = jnp.stack([p["g1"], p["bt1"]]).astype(jnp.float32)    # (2, Cout)
    gb2 = jnp.stack([p["g2"], p["bt2"]]).astype(jnp.float32)

    # Per-channel reduce / broadcast matrices for BN in the (w, c) lane layout.
    r = jnp.tile(jnp.eye(Cout, dtype=jnp.float32), (W, 1))      # (W*Cout, Cout)
    rt = r.T                                                    # (Cout, W*Cout)

    # Even / odd W-column selectors for the pool (lane index = w*Cout + c).
    won = np.arange(W // 2)
    cn = np.arange(Cout)
    cols = (won[:, None] * Cout + cn[None, :]).reshape(-1)
    rows_e = ((2 * won)[:, None] * Cout + cn[None, :]).reshape(-1)
    rows_o = ((2 * won + 1)[:, None] * Cout + cn[None, :]).reshape(-1)
    se = jnp.zeros((WC, (W // 2) * Cout), jnp.float32).at[rows_e, cols].set(1.0)
    so = jnp.zeros((WC, (W // 2) * Cout), jnp.float32).at[rows_o, cols].set(1.0)

    out2d = pl.pallas_call(
        encoder_block_kernel,
        out_shape=jax.ShapeDtypeStruct((B * (H // 2), (W // 2) * Cout), jnp.float32),
        in_specs=[pl.BlockSpec(memory_space=pltpu.MemorySpace.VMEM)] * 9,
        out_specs=pl.BlockSpec(memory_space=pltpu.MemorySpace.VMEM),
        scratch_shapes=[pltpu.VMEM((B, H + 2, WC), jnp.bfloat16)],
        compiler_params=pltpu.CompilerParams(vmem_limit_bytes=32 * 1024 * 1024),
    )(xh, a1, a2, gb1, gb2, r, rt, se, so)

    out = out2d.reshape(B, H // 2, W // 2, Cout)     # rows were (b, h2); lanes (w2, c)
    return jnp.transpose(out, (0, 3, 1, 2))


def init_params(key, cin, cout):
    ks = jax.random.split(key, 4)
    k1 = 1.0 / np.sqrt(cin * 9.0)
    k2 = 1.0 / np.sqrt(cout * 9.0)
    return dict(
        w1=jax.random.uniform(ks[0], (cout, cin, 3, 3), jnp.float32, -k1, k1),
        b1=jax.random.uniform(ks[1], (cout,), jnp.float32, -k1, k1),
        g1=jnp.ones((cout,), jnp.float32),
        bt1=jnp.zeros((cout,), jnp.float32),
        w2=jax.random.uniform(ks[2], (cout, cout, 3, 3), jnp.float32, -k2, k2),
        b2=jax.random.uniform(ks[3], (cout,), jnp.float32, -k2, k2),
        g2=jnp.ones((cout,), jnp.float32),
        bt2=jnp.zeros((cout,), jnp.float32),
    )


def reference(x_nchw, p):
    """Pure-JAX reference mirroring the PyTorch forward (train-mode BN, f32)."""
    dn = ("NCHW", "OIHW", "NCHW")

    def conv(x, w, b):
        y = jax.lax.conv_general_dilated(
            x, w, (1, 1), ((1, 1), (1, 1)), dimension_numbers=dn,
            precision=jax.lax.Precision.HIGHEST)
        return y + b[None, :, None, None]

    def bn_relu(y, g, bt):
        mean = jnp.mean(y, axis=(0, 2, 3), keepdims=True)
        var = jnp.mean((y - mean) ** 2, axis=(0, 2, 3), keepdims=True)
        yn = (y - mean) * jax.lax.rsqrt(var + EPS)
        return jnp.maximum(yn * g[None, :, None, None] + bt[None, :, None, None], 0.0)

    y = bn_relu(conv(x_nchw, p["w1"], p["b1"]), p["g1"], p["bt1"])
    y = bn_relu(conv(y, p["w2"], p["b2"]), p["g2"], p["bt2"])
    return jax.lax.reduce_window(y, -jnp.inf, jax.lax.max,
                                 (1, 1, 2, 2), (1, 1, 2, 2), "VALID")


if __name__ == "__main__":
    key = jax.random.PRNGKey(0)
    kx, kp = jax.random.split(key)
    B, Cin, Cout, H, W = 2, 4, 8, 16, 16

    x = jax.random.normal(kx, (B, Cin, H, W), jnp.float32)
    params = init_params(kp, Cin, Cout)

    out = encoder_block_pallas(x, params)
    out = jax.block_until_ready(out)
    assert out.shape == (B, Cout, H // 2, W // 2)

    ref = jax.block_until_ready(reference(x, params))
    # bf16 MXU operands (per perf review) through two conv+BN layers: BN rescaling
    # amplifies the raw conv rounding noise, so the tolerance is loosened vs the old
    # f32-HIGHEST kernel.  Real bugs show up as O(0.3+) errors and are still caught.
    np.testing.assert_allclose(np.asarray(out), np.asarray(ref),
                               rtol=2e-2, atol=5e-2)
    print("KERNEL_OK")
</pallas_src>

<mosaic_0001>
module attributes {stable_mosaic.version = 11 : i64} {
  func.func @encoder_block_kernel(%arg0: memref<2x18x64xbf16, #tpu.memory_space<vmem>>, %arg1: memref<3x64x128xbf16, #tpu.memory_space<vmem>>, %arg2: memref<3x128x128xbf16, #tpu.memory_space<vmem>>, %arg3: memref<2x8xf32, #tpu.memory_space<vmem>>, %arg4: memref<2x8xf32, #tpu.memory_space<vmem>>, %arg5: memref<128x8xf32, #tpu.memory_space<vmem>>, %arg6: memref<8x128xf32, #tpu.memory_space<vmem>>, %arg7: memref<128x64xf32, #tpu.memory_space<vmem>>, %arg8: memref<128x64xf32, #tpu.memory_space<vmem>>, %arg9: memref<16x64xf32, #tpu.memory_space<vmem>>, %arg10: memref<2x18x128xbf16, #tpu.memory_space<vmem>>) attributes {dimension_semantics = [], scalar_prefetch = 0 : i64, scratch_operands = 1 : i64, tpu.core_type = #tpu.core_type<tc>} {
    %cst = arith.constant 0.000000e+00 : f32
    %0 = vector.broadcast %cst : f32 to vector<32x128xf32>
    %c0 = arith.constant 0 : index
    %c0_0 = arith.constant 0 : index
    %c0_1 = arith.constant 0 : index
    %1 = vector.load %arg0[%c0, %c0_0, %c0_1] : memref<2x18x64xbf16, #tpu.memory_space<vmem>>, vector<2x16x64xbf16>
    %2 = vector.shape_cast %1 : vector<2x16x64xbf16> to vector<32x64xbf16>
    %c0_2 = arith.constant 0 : index
    %c0_3 = arith.constant 0 : index
    %c0_4 = arith.constant 0 : index
    %3 = vector.load %arg1[%c0_2, %c0_3, %c0_4] : memref<3x64x128xbf16, #tpu.memory_space<vmem>>, vector<1x64x128xbf16>
    %4 = vector.shape_cast %3 : vector<1x64x128xbf16> to vector<64x128xbf16>
    %cst_5 = arith.constant dense<0.000000e+00> : vector<32x128xf32>
    %5 = tpu.matmul %2, %4, %cst_5 {dimension_numbers = #tpu.dot_dimension_numbers<[1], [0], [0], [1], [0, 0, 1, 1], [], []>} : vector<32x64xbf16>, vector<64x128xbf16>, vector<32x128xf32> -> vector<32x128xf32>
    %6 = arith.addf %0, %5 : vector<32x128xf32>
    %c0_6 = arith.constant 0 : index
    %c1 = arith.constant 1 : index
    %c0_7 = arith.constant 0 : index
    %7 = vector.load %arg0[%c0_6, %c1, %c0_7] : memref<2x18x64xbf16, #tpu.memory_space<vmem>>, vector<2x16x64xbf16>
    %8 = vector.shape_cast %7 : vector<2x16x64xbf16> to vector<32x64xbf16>
    %c1_8 = arith.constant 1 : index
    %c0_9 = arith.constant 0 : index
    %c0_10 = arith.constant 0 : index
    %9 = vector.load %arg1[%c1_8, %c0_9, %c0_10] : memref<3x64x128xbf16, #tpu.memory_space<vmem>>, vector<1x64x128xbf16>
    %10 = vector.shape_cast %9 : vector<1x64x128xbf16> to vector<64x128xbf16>
    %cst_11 = arith.constant dense<0.000000e+00> : vector<32x128xf32>
    %11 = tpu.matmul %8, %10, %cst_11 {dimension_numbers = #tpu.dot_dimension_numbers<[1], [0], [0], [1], [0, 0, 1, 1], [], []>} : vector<32x64xbf16>, vector<64x128xbf16>, vector<32x128xf32> -> vector<32x128xf32>
    %12 = arith.addf %6, %11 : vector<32x128xf32>
    %c0_12 = arith.constant 0 : index
    %c2 = arith.constant 2 : index
    %c0_13 = arith.constant 0 : index
    %13 = vector.load %arg0[%c0_12, %c2, %c0_13] : memref<2x18x64xbf16, #tpu.memory_space<vmem>>, vector<2x16x64xbf16>
    %14 = vector.shape_cast %13 : vector<2x16x64xbf16> to vector<32x64xbf16>
    %c2_14 = arith.constant 2 : index
    %c0_15 = arith.constant 0 : index
    %c0_16 = arith.constant 0 : index
    %15 = vector.load %arg1[%c2_14, %c0_15, %c0_16] : memref<3x64x128xbf16, #tpu.memory_space<vmem>>, vector<1x64x128xbf16>
    %16 = vector.shape_cast %15 : vector<1x64x128xbf16> to vector<64x128xbf16>
    %cst_17 = arith.constant dense<0.000000e+00> : vector<32x128xf32>
    %17 = tpu.matmul %14, %16, %cst_17 {dimension_numbers = #tpu.dot_dimension_numbers<[1], [0], [0], [1], [0, 0, 1, 1], [], []>} : vector<32x64xbf16>, vector<64x128xbf16>, vector<32x128xf32> -> vector<32x128xf32>
    %18 = arith.addf %12, %17 : vector<32x128xf32>
    %cst_18 = arith.constant dense<0.000000e+00> : vector<128xf32>
    %19 = vector.multi_reduction <add>, %18, %cst_18 [0] : vector<32x128xf32> to vector<128xf32>
    %20 = vector.shape_cast %19 : vector<128xf32> to vector<1x128xf32>
    %21 = arith.mulf %18, %18 : vector<32x128xf32>
    %cst_19 = arith.constant dense<0.000000e+00> : vector<128xf32>
    %22 = vector.multi_reduction <add>, %21, %cst_19 [0] : vector<32x128xf32> to vector<128xf32>
    %23 = vector.shape_cast %22 : vector<128xf32> to vector<1x128xf32>
    %24 = tpu.concatenate %20, %23 in 0 : vector<1x128xf32>, vector<1x128xf32> -> vector<2x128xf32>
    %c0_20 = arith.constant 0 : index
    %c0_21 = arith.constant 0 : index
    %25 = vector.load %arg5[%c0_20, %c0_21] : memref<128x8xf32, #tpu.memory_space<vmem>>, vector<128x8xf32>
    %cst_22 = arith.constant dense<0.000000e+00> : vector<2x8xf32>
    %26 = tpu.matmul %24, %25, %cst_22 {dimension_numbers = #tpu.dot_dimension_numbers<[1], [0], [0], [1], [0, 0, 1, 1], [], []>} : vector<2x128xf32>, vector<128x8xf32>, vector<2x8xf32> -> vector<2x8xf32>
    %27 = vector.extract_strided_slice %26 {offsets = [0, 0], sizes = [1, 8], strides = [1, 1]} : vector<2x8xf32> to vector<1x8xf32>
    %cst_23 = arith.constant 0.001953125 : f32
    %28 = vector.broadcast %cst_23 : f32 to vector<1x8xf32>
    %29 = arith.mulf %27, %28 : vector<1x8xf32>
    %30 = vector.extract_strided_slice %26 {offsets = [1, 0], sizes = [1, 8], strides = [1, 1]} : vector<2x8xf32> to vector<1x8xf32>
    %cst_24 = arith.constant 0.001953125 : f32
    %31 = vector.broadcast %cst_24 : f32 to vector<1x8xf32>
    %32 = arith.mulf %30, %31 : vector<1x8xf32>
    %33 = arith.mulf %29, %29 : vector<1x8xf32>
    %34 = arith.subf %32, %33 : vector<1x8xf32>
    %c0_25 = arith.constant 0 : index
    %c0_26 = arith.constant 0 : index
    %35 = vector.load %arg3[%c0_25, %c0_26] : memref<2x8xf32, #tpu.memory_space<vmem>>, vector<1x8xf32>
    %cst_27 = arith.constant 9.99999974E-6 : f32
    %36 = vector.broadcast %cst_27 : f32 to vector<1x8xf32>
    %37 = arith.addf %34, %36 : vector<1x8xf32>
    %38 = math.rsqrt %37 : vector<1x8xf32>
    %39 = arith.mulf %35, %38 : vector<1x8xf32>
    %c1_28 = arith.constant 1 : index
    %c0_29 = arith.constant 0 : index
    %40 = vector.load %arg3[%c1_28, %c0_29] : memref<2x8xf32, #tpu.memory_space<vmem>>, vector<1x8xf32>
    %41 = arith.mulf %29, %39 : vector<1x8xf32>
    %42 = arith.subf %40, %41 : vector<1x8xf32>
    %43 = tpu.concatenate %39, %42 in 0 : vector<1x8xf32>, vector<1x8xf32> -> vector<2x8xf32>
    %c0_30 = arith.constant 0 : index
    %c0_31 = arith.constant 0 : index
    %44 = vector.load %arg6[%c0_30, %c0_31] : memref<8x128xf32, #tpu.memory_space<vmem>>, vector<8x128xf32>
    %cst_32 = arith.constant dense<0.000000e+00> : vector<2x128xf32>
    %45 = tpu.matmul %43, %44, %cst_32 {dimension_numbers = #tpu.dot_dimension_numbers<[1], [0], [0], [1], [0, 0, 1, 1], [], []>} : vector<2x8xf32>, vector<8x128xf32>, vector<2x128xf32> -> vector<2x128xf32>
    %46 = vector.extract_strided_slice %45 {offsets = [0, 0], sizes = [1, 128], strides = [1, 1]} : vector<2x128xf32> to vector<1x128xf32>
    %47 = vector.broadcast %46 : vector<1x128xf32> to vector<32x128xf32>
    %48 = arith.mulf %18, %47 : vector<32x128xf32>
    %49 = vector.extract_strided_slice %45 {offsets = [1, 0], sizes = [1, 128], strides = [1, 1]} : vector<2x128xf32> to vector<1x128xf32>
    %50 = vector.broadcast %49 : vector<1x128xf32> to vector<32x128xf32>
    %51 = arith.addf %48, %50 : vector<32x128xf32>
    %cst_33 = arith.constant 0.000000e+00 : f32
    %52 = vector.broadcast %cst_33 : f32 to vector<32x128xf32>
    %53 = arith.maximumf %51, %52 : vector<32x128xf32>
    %cst_34 = arith.constant 0.000000e+00 : f32
    %54 = vector.broadcast %cst_34 : f32 to vector<2x1x128xf32>
    %55 = vector.shape_cast %53 : vector<32x128xf32> to vector<2x16x128xf32>
    %56 = tpu.concatenate %54, %55, %54 in 1 : vector<2x1x128xf32>, vector<2x16x128xf32>, vector<2x1x128xf32> -> vector<2x18x128xf32>
    %57 = arith.truncf %56 : vector<2x18x128xf32> to vector<2x18x128xbf16>
    %c0_35 = arith.constant 0 : index
    %c0_36 = arith.constant 0 : index
    %c0_37 = arith.constant 0 : index
    %58 = vector.load %arg10[%c0_35, %c0_36, %c0_37] : memref<2x18x128xbf16, #tpu.memory_space<vmem>>, vector<2x18x128xbf16>
    tpu.vector_store %arg10[%c0_35, %c0_36, %c0_37], %57 {strides = array<i32>} : memref<2x18x128xbf16, #tpu.memory_space<vmem>>, vector<2x18x128xbf16>,
    %cst_38 = arith.constant 0.000000e+00 : f32
    %59 = vector.broadcast %cst_38 : f32 to vector<32x128xf32>
    %c0_39 = arith.constant 0 : index
    %c0_40 = arith.constant 0 : index
    %c0_41 = arith.constant 0 : index
    %60 = vector.load %arg10[%c0_39, %c0_40, %c0_41] : memref<2x18x128xbf16, #tpu.memory_space<vmem>>, vector<2x16x128xbf16>
    %61 = vector.shape_cast %60 : vector<2x16x128xbf16> to vector<32x128xbf16>
    %c0_42 = arith.constant 0 : index
    %c0_43 = arith.constant 0 : index
    %c0_44 = arith.constant 0 : index
    %62 = vector.load %arg2[%c0_42, %c0_43, %c0_44] : memref<3x128x128xbf16, #tpu.memory_space<vmem>>, vector<1x128x128xbf16>
    %63 = vector.shape_cast %62 : vector<1x128x128xbf16> to vector<128x128xbf16>
    %cst_45 = arith.constant dense<0.000000e+00> : vector<32x128xf32>
    %64 = tpu.matmul %61, %63, %cst_45 {dimension_numbers = #tpu.dot_dimension_numbers<[1], [0], [0], [1], [0, 0, 1, 1], [], []>} : vector<32x128xbf16>, vector<128x128xbf16>, vector<32x128xf32> -> vector<32x128xf32>
    %65 = arith.addf %59, %64 : vector<32x128xf32>
    %c0_46 = arith.constant 0 : index
    %c1_47 = arith.constant 1 : index
    %c0_48 = arith.constant 0 : index
    %66 = vector.load %arg10[%c0_46, %c1_47, %c0_48] : memref<2x18x128xbf16, #tpu.memory_space<vmem>>, vector<2x16x128xbf16>
    %67 = vector.shape_cast %66 : vector<2x16x128xbf16> to vector<32x128xbf16>
    %c1_49 = arith.constant 1 : index
    %c0_50 = arith.constant 0 : index
    %c0_51 = arith.constant 0 : index
    %68 = vector.load %arg2[%c1_49, %c0_50, %c0_51] : memref<3x128x128xbf16, #tpu.memory_space<vmem>>, vector<1x128x128xbf16>
    %69 = vector.shape_cast %68 : vector<1x128x128xbf16> to vector<128x128xbf16>
    %cst_52 = arith.constant dense<0.000000e+00> : vector<32x128xf32>
    %70 = tpu.matmul %67, %69, %cst_52 {dimension_numbers = #tpu.dot_dimension_numbers<[1], [0], [0], [1], [0, 0, 1, 1], [], []>} : vector<32x128xbf16>, vector<128x128xbf16>, vector<32x128xf32> -> vector<32x128xf32>
    %71 = arith.addf %65, %70 : vector<32x128xf32>
    %c0_53 = arith.constant 0 : index
    %c2_54 = arith.constant 2 : index
    %c0_55 = arith.constant 0 : index
    %72 = vector.load %arg10[%c0_53, %c2_54, %c0_55] : memref<2x18x128xbf16, #tpu.memory_space<vmem>>, vector<2x16x128xbf16>
    %73 = vector.shape_cast %72 : vector<2x16x128xbf16> to vector<32x128xbf16>
    %c2_56 = arith.constant 2 : index
    %c0_57 = arith.constant 0 : index
    %c0_58 = arith.constant 0 : index
    %74 = vector.load %arg2[%c2_56, %c0_57, %c0_58] : memref<3x128x128xbf16, #tpu.memory_space<vmem>>, vector<1x128x128xbf16>
    %75 = vector.shape_cast %74 : vector<1x128x128xbf16> to vector<128x128xbf16>
    %cst_59 = arith.constant dense<0.000000e+00> : vector<32x128xf32>
    %76 = tpu.matmul %73, %75, %cst_59 {dimension_numbers = #tpu.dot_dimension_numbers<[1], [0], [0], [1], [0, 0, 1, 1], [], []>} : vector<32x128xbf16>, vector<128x128xbf16>, vector<32x128xf32> -> vector<32x128xf32>
    %77 = arith.addf %71, %76 : vector<32x128xf32>
    %cst_60 = arith.constant dense<0.000000e+00> : vector<128xf32>
    %78 = vector.multi_reduction <add>, %77, %cst_60 [0] : vector<32x128xf32> to vector<128xf32>
    %79 = vector.shape_cast %78 : vector<128xf32> to vector<1x128xf32>
    %80 = arith.mulf %77, %77 : vector<32x128xf32>
    %cst_61 = arith.constant dense<0.000000e+00> : vector<128xf32>
    %81 = vector.multi_reduction <add>, %80, %cst_61 [0] : vector<32x128xf32> to vector<128xf32>
    %82 = vector.shape_cast %81 : vector<128xf32> to vector<1x128xf32>
    %83 = tpu.concatenate %79, %82 in 0 : vector<1x128xf32>, vector<1x128xf32> -> vector<2x128xf32>
    %c0_62 = arith.constant 0 : index
    %c0_63 = arith.constant 0 : index
    %84 = vector.load %arg5[%c0_62, %c0_63] : memref<128x8xf32, #tpu.memory_space<vmem>>, vector<128x8xf32>
    %cst_64 = arith.constant dense<0.000000e+00> : vector<2x8xf32>
    %85 = tpu.matmul %83, %84, %cst_64 {dimension_numbers = #tpu.dot_dimension_numbers<[1], [0], [0], [1], [0, 0, 1, 1], [], []>} : vector<2x128xf32>, vector<128x8xf32>, vector<2x8xf32> -> vector<2x8xf32>
    %86 = vector.extract_strided_slice %85 {offsets = [0, 0], sizes = [1, 8], strides = [1, 1]} : vector<2x8xf32> to vector<1x8xf32>
    %cst_65 = arith.constant 0.001953125 : f32
    %87 = vector.broadcast %cst_65 : f32 to vector<1x8xf32>
    %88 = arith.mulf %86, %87 : vector<1x8xf32>
    %89 = vector.extract_strided_slice %85 {offsets = [1, 0], sizes = [1, 8], strides = [1, 1]} : vector<2x8xf32> to vector<1x8xf32>
    %cst_66 = arith.constant 0.001953125 : f32
    %90 = vector.broadcast %cst_66 : f32 to vector<1x8xf32>
    %91 = arith.mulf %89, %90 : vector<1x8xf32>
    %92 = arith.mulf %88, %88 : vector<1x8xf32>
    %93 = arith.subf %91, %92 : vector<1x8xf32>
    %c0_67 = arith.constant 0 : index
    %c0_68 = arith.constant 0 : index
    %94 = vector.load %arg4[%c0_67, %c0_68] : memref<2x8xf32, #tpu.memory_space<vmem>>, vector<1x8xf32>
    %cst_69 = arith.constant 9.99999974E-6 : f32
    %95 = vector.broadcast %cst_69 : f32 to vector<1x8xf32>
    %96 = arith.addf %93, %95 : vector<1x8xf32>
    %97 = math.rsqrt %96 : vector<1x8xf32>
    %98 = arith.mulf %94, %97 : vector<1x8xf32>
    %c1_70 = arith.constant 1 : index
    %c0_71 = arith.constant 0 : index
    %99 = vector.load %arg4[%c1_70, %c0_71] : memref<2x8xf32, #tpu.memory_space<vmem>>, vector<1x8xf32>
    %100 = arith.mulf %88, %98 : vector<1x8xf32>
    %101 = arith.subf %99, %100 : vector<1x8xf32>
    %102 = tpu.concatenate %98, %101 in 0 : vector<1x8xf32>, vector<1x8xf32> -> vector<2x8xf32>
    %c0_72 = arith.constant 0 : index
    %c0_73 = arith.constant 0 : index
    %103 = vector.load %arg6[%c0_72, %c0_73] : memref<8x128xf32, #tpu.memory_space<vmem>>, vector<8x128xf32>
    %cst_74 = arith.constant dense<0.000000e+00> : vector<2x128xf32>
    %104 = tpu.matmul %102, %103, %cst_74 {dimension_numbers = #tpu.dot_dimension_numbers<[1], [0], [0], [1], [0, 0, 1, 1], [], []>} : vector<2x8xf32>, vector<8x128xf32>, vector<2x128xf32> -> vector<2x128xf32>
    %105 = vector.extract_strided_slice %104 {offsets = [0, 0], sizes = [1, 128], strides = [1, 1]} : vector<2x128xf32> to vector<1x128xf32>
    %106 = vector.broadcast %105 : vector<1x128xf32> to vector<32x128xf32>
    %107 = arith.mulf %77, %106 : vector<32x128xf32>
    %108 = vector.extract_strided_slice %104 {offsets = [1, 0], sizes = [1, 128], strides = [1, 1]} : vector<2x128xf32> to vector<1x128xf32>
    %109 = vector.broadcast %108 : vector<1x128xf32> to vector<32x128xf32>
    %110 = arith.addf %107, %109 : vector<32x128xf32>
    %cst_75 = arith.constant 0.000000e+00 : f32
    %111 = vector.broadcast %cst_75 : f32 to vector<32x128xf32>
    %112 = arith.maximumf %110, %111 : vector<32x128xf32>
    %113 = vector.shape_cast %112 : vector<32x128xf32> to vector<16x2x128xf32>
    %114 = vector.extract_strided_slice %113 {offsets = [0, 0, 0], sizes = [16, 1, 128], strides = [1, 1, 1]} : vector<16x2x128xf32> to vector<16x1x128xf32>
    %115 = vector.shape_cast %114 : vector<16x1x128xf32> to vector<16x128xf32>
    %116 = vector.extract_strided_slice %113 {offsets = [0, 1, 0], sizes = [16, 1, 128], strides = [1, 1, 1]} : vector<16x2x128xf32> to vector<16x1x128xf32>
    %117 = vector.shape_cast %116 : vector<16x1x128xf32> to vector<16x128xf32>
    %118 = arith.maximumf %115, %117 : vector<16x128xf32>
    %c0_76 = arith.constant 0 : index
    %c0_77 = arith.constant 0 : index
    %119 = vector.load %arg7[%c0_76, %c0_77] : memref<128x64xf32, #tpu.memory_space<vmem>>, vector<128x64xf32>
    %cst_78 = arith.constant dense<0.000000e+00> : vector<16x64xf32>
    %120 = tpu.matmul %118, %119, %cst_78 {dimension_numbers = #tpu.dot_dimension_numbers<[1], [0], [0], [1], [0, 0, 1, 1], [], []>} : vector<16x128xf32>, vector<128x64xf32>, vector<16x64xf32> -> vector<16x64xf32>
    %c0_79 = arith.constant 0 : index
    %c0_80 = arith.constant 0 : index
    %121 = vector.load %arg8[%c0_79, %c0_80] : memref<128x64xf32, #tpu.memory_space<vmem>>, vector<128x64xf32>
    %cst_81 = arith.constant dense<0.000000e+00> : vector<16x64xf32>
    %122 = tpu.matmul %118, %121, %cst_81 {dimension_numbers = #tpu.dot_dimension_numbers<[1], [0], [0], [1], [0, 0, 1, 1], [], []>} : vector<16x128xf32>, vector<128x64xf32>, vector<16x64xf32> -> vector<16x64xf32>
    %123 = arith.maximumf %120, %122 : vector<16x64xf32>
    %c0_82 = arith.constant 0 : index
    %c0_83 = arith.constant 0 : index
    %124 = vector.load %arg9[%c0_82, %c0_83] : memref<16x64xf32, #tpu.memory_space<vmem>>, vector<16x64xf32>
    tpu.vector_store %arg9[%c0_82, %c0_83], %123 {strides = array<i32>} : memref<16x64xf32, #tpu.memory_space<vmem>>, vector<16x64xf32>,
    return
  }
}

</mosaic_0001>

<bundles_post_ra>
// kernel: tpu_custom_call.1
= control target key start
LH: loop header
LB: loop body
LE: loop exit
PB: predicated region body
PF: predicated region fallthrough
CT: control target
= control target key end

     0   :  { %vm138_vm0 = vcmask 523264   ;;  %vm289_vm1 = vcmask 1042432   ;;  %vm48_vm2 = vsmask.f32 3328  ;;  %vm49_vm3 = vsmask.f32 7440  ;;  %s3038_s0 = inlined_call_operand.vmem [shape: bf16[2,18,64], index: 0, kind: input, shape index: {}]   ;;  %s3039_s1 = inlined_call_operand.vmem [shape: bf16[3,64,128], index: 1, kind: input, shape index: {}]   ;;  %s3040_s2 = inlined_call_operand.vmem [shape: bf16[3,128,128], index: 2, kind: input, shape index: {}]   ;;  %s3041_s3 = inlined_call_operand.vmem [shape: f32[2,8], index: 3, kind: input, shape index: {}]   ;;  %s3042_s4 = inlined_call_operand.vmem [shape: f32[2,8], index: 4, kind: input, shape index: {}]   ;;  %s3043_s5 = inlined_call_operand.vmem [shape: f32[128,8], index: 5, kind: input, shape index: {}]   ;;  %s3044_s6 = inlined_call_operand.vmem [shape: f32[8,128], index: 6, kind: input, shape index: {}]   ;;  %s3045_s7 = inlined_call_operand.vmem [shape: f32[128,64], index: 7, kind: input, shape index: {}]   ;;  %s3046_s8 = inlined_call_operand.vmem [shape: f32[128,64], index: 8, kind: input, shape index: {}]   ;;  %s3047_s9 = inlined_call_operand.hbm [shape: f32[16,64], index: 9, kind: output, shape index: {}]  }
   0x1   :  { %v2323_v0 = vld [vmem:[%s3039_s1 + $0x38] sm:$0xff]   ;;  %v2325_v2 = vld [vmem:[%s3039_s1 + $0x30] sm:$0xff]   ;;  %v2327_v4 = vld [vmem:[%s3039_s1 + $0x28] sm:$0xff]   ;;  %vm290_vm4 = vcmask 1046532  }
   0x2   :  { %v2324_v1 = vld [vmem:[%s3039_s1 + $0x18] sm:$0xff]   ;;  %2071 = vmatprep.subr.bf16.mxu0 %v2323_v0  ;;  %v2326_v3 = vld [vmem:[%s3039_s1 + $0x10] sm:$0xff]   ;;  %v2328_v5 = vld [vmem:[%s3039_s1 + $0x8] sm:$0xff]  }
   0x3   :  { %2083 = vmatprep.subr.bf16.mxu1 %v2324_v1  ;;  %2072 = vmatpush3.bf16.msra.mxu0 %v2323_v0  ;;  %v2329_v6 = vld [vmem:[%s3039_s1 + $0x20] sm:$0xff]   ;;  %v2480_v10 = vld [vmem:[%s3038_s0 + $0x8] sm:$0x1]  ;;  %v36_v16 = vld [vmem:[%s3038_s0 + $0xc] sm:$0xf] }
   0x4   :  { %2084 = vmatpush3.bf16.msra.mxu1 %v2324_v1  ;;  %2073 = vmatprep.subr.bf16.mxu0 %v2325_v2  ;;  %v2330_v7 = vld [vmem:[%s3039_s1] sm:$0xff]   ;;  %v71_v15 = vshll.u32 %v2480_v10, 16  ;;  %v2492_v20 = vld [vmem:[%s3038_s0 + $0x10] sm:$0xf]  ;;  %v2497_v21 = vld [vmem:[%s3038_s0 + $0x14] sm:$0x1] }
   0x5   :  { %2085 = vmatprep.subr.bf16.mxu1 %v2326_v3  ;;  %v34_v8 = vld [vmem:[%s3038_s0] sm:$0xf]  ;;  %v2475_v9 = vld [vmem:[%s3038_s0 + $0x4] sm:$0xf]  ;;  %v297_v24 = vrot.slane %v2480_v10, 5  ;;  %v76_v25 = vshrl.u32 %v36_v16, 16  ;;  %vm2508_vm5 = vmor %vm48_vm2, %vm49_vm3  ;;  %v1825_v42 = vcombine.low %v36_v16, %v2492_v20 }
   0x6   :  { %v52_v11 = vshrl.u32 %v34_v8, 16  ;;  %v55_v12 = vshll.u32 %v34_v8, 16  ;;  %v61_v13 = vshll.u32 %v2475_v9, 16  ;;  %v65_v14 = vshrl.u32 %v2475_v9, 16  ;;  %v2333_v30 = vld [vmem:[%s3039_s1 + $0x58] sm:$0xff]   ;;  %vm2525_vm6 = vmor %vm289_vm1, %vm290_vm4  ;;  %v2334_v57 = vld [vmem:[%s3039_s1 + $0x50] sm:$0xff]  }
   0x7   :  { %2074 = vmatpush3.bf16.msra.mxu0 %v2325_v2  ;;  %v1824_v19 = vcombine.low %v34_v8, %v2475_v9  ;;  %v79_v27 = vshll.u32 %v36_v16, 16  ;;  %v85_v28 = vshll.u32 %v2492_v20, 16  ;;  %v89_v29 = vshrl.u32 %v2492_v20, 16  ;;  %v283_v49 = vld [vmem:[%s3038_s0] sm:$0xe] }
   0x8   :  { %2086 = vmatpush3.bf16.msra.mxu1 %v2326_v3  ;;  %2075 = vmatprep.subr.bf16.mxu0 %v2327_v4  ;;  %v54_v17 = vrot.slane %v52_v11, 4  ;;  %v57_v18 = vrot.slane %v55_v12, 5  ;;  %v63_v22 = vrot.slane %v61_v13, 5  ;;  %v67_v23 = vrot.slane %v65_v14, 4  ;;  %v284_v51 = vld [vmem:[%s3038_s0 + $0xc] sm:$0xe] }
   0x9   :  { %2087 = vmatprep.subr.bf16.mxu1 %v2328_v5  ;;  %2091 = vmatprep.mubr.msk.bf16.mxu1 %vm138_vm0, %v1824_v19  ;;  %v73_v33 = vrot.slane %v71_v15, 5  ;;  %v78_v34 = vrot.slane %v76_v25, 4  ;;  %v95_v35 = vshll.u32 %v2497_v21, 16  ;;  %v81_v37 = vrot.slane %v79_v27, 5  ;;  %v2335_v3 = vld [vmem:[%s3039_s1 + $0x48] sm:$0xff]  }
   0xa   :  { %v58_v26 = vor.u32 %v57_v18, %v54_v17  ;;  %v68_v32 = vor.u32 %v67_v23, %v63_v22  ;;  %v87_v38 = vrot.slane %v85_v28, 5  ;;  %v91_v39 = vrot.slane %v89_v29, 4 }
   0xb   :  { %2076 = vmatpush3.bf16.msra.mxu0 %v2327_v4  ;;  %v97_v41 = vrot.slane %v95_v35, 5  ;;  %v82_v44 = vor.u32 %v81_v37, %v78_v34  ;;  %v294_v46 = vrot.slane %v2475_v9, 5  ;;  %v304_v48 = vrot.slane %v2497_v21, 5  ;;  %v2336_v4 = vld [vmem:[%s3039_s1 + $0x40] sm:$0xff]  }
   0xc   :  { %2088 = vmatpush3.bf16.msra.mxu1 %v2328_v5  ;;  %2077 = vmatprep.subr.bf16.mxu0 %v2329_v6  ;;  %v59_v36 = vrot.slane %v58_v26, 4  ;;  %v69_v40 = vrot.slane %v68_v32, 4  ;;  %v92_v45 = vor.u32 %v91_v39, %v87_v38  ;;  %v301_v52 = vrot.slane %v2492_v20, 5 }
   0xd   :  { %2089 = vmatprep.subr.bf16.mxu1 %v2330_v7  ;;  %v83_v54 = vrot.slane %v82_v44, 4  ;;  %v1832_v56 = vrot.slane %v283_v49, 9  ;;  %v296_v58 = vrot.slane %v294_v46, 4  ;;  %v1833_v59 = vrot.slane %v284_v51, 9 }
   0xe   :  { %v64_v43 = vsel %vm2508_vm5, %v59_v36, %v63_v22  ;;  %v74_v47 = vsel %vm2508_vm5, %v69_v40, %v73_v33  ;;  %v93_v55 = vrot.slane %v92_v45, 4  ;;  %v303_v60 = vrot.slane %v301_v52, 4 }
   0xf   :  { %2078 = vmatpush3.bf16.msra.mxu0 %v2329_v6  ;;  %v1816_v53 = vcombine.low %v64_v43, %v74_v47  ;;  %v88_v61 = vsel %vm2508_vm5, %v83_v54, %v87_v38  ;;  %v295_v63 = vsel %vm2525_vm6, %v1832_v56, %v294_v46  ;;  %v298_v1 = vsel %vm2525_vm6, %v296_v58, %v297_v24 }
  0x10   :  { %2090 = vmatpush3.bf16.msra.mxu1 %v2330_v7  ;;  %2095 = vmatprep.subr.bf16.mxu0 %v2333_v30  ;;  %v98_v62 = vsel %vm2508_vm5, %v93_v55, %v97_v41  ;;  %v1842_v2 = vcombine.low %v295_v63, %v298_v1  ;;  %v302_v5 = vsel %vm2525_vm6, %v1833_v59, %v301_v52 }
  0x11   :  { %2079 = vmatprep.mubr.msk.bf16.mxu0 %vm138_vm0, %v1816_v53  ;;  %v1817_v0 = vcombine.low %v88_v61, %v98_v62  ;;  %v305_v6 = vsel %vm2525_vm6, %v303_v60, %v304_v48 }
  0x12   :  { %v1843_v7 = vcombine.low %v302_v5, %v305_v6 }
  0x13   :  { %2092 = vmatmul.mubr.msk.bf16.vlgmr.msra.gmra.mxu1 %vm138_vm0, %v1825_v42  ;;  %2080 = vmatmul.mubr.msk.bf16.vlgmr.msra.gmra.mxu0 %vm138_vm0, %v1817_v0 }
  0x14   :  { %2096 = vmatpush3.bf16.msra.mxu0 %v2333_v30  ;;  %2103 = vmatprep.mubr.msk.bf16.mxu0 %vm138_vm0, %v1842_v2 }
  0x15   :  { %2097 = vmatprep.subr.bf16.mxu0 %v2334_v57 }
  0x18   :  { %2098 = vmatpush3.bf16.msra.mxu0 %v2334_v57 }
  0x19   :  { %2099 = vmatprep.subr.bf16.mxu0 %v2335_v3 }
  0x1c   :  { %2100 = vmatpush3.bf16.msra.mxu0 %v2335_v3 }
  0x1d   :  { %2101 = vmatprep.subr.bf16.mxu0 %v2336_v4 }
  0x1e   :  { %14 = vsyncpa [#allocation4], 0  ;;  %v2562_v8 = vld [vmem:[%s3043_s5 + $0x78] sm:$0xff]  ;;  %v2389_v9 = vmov 0.0   ;;  %v2571_v10 = vld [vmem:[%s3043_s5 + $0x70] sm:$0xff]  ;;  %vm2390_vm7 = vmmov 0  }
  0x1f   :  { %2107 = vmatprep.subr.mxu1 %v2389_v9  ;;  %v2578_v11 = vld [vmem:[%s3043_s5 + $0x68] sm:$0xff]  ;;  %v2585_v12 = vld [vmem:[%s3043_s5 + $0x60] sm:$0xff]  ;;  %v2592_v13 = vld [vmem:[%s3043_s5 + $0x58] sm:$0xff]  ;;  %2139 = vmatprep.mubr.msk.f32.mxu1 %vm2390_vm7, %v2389_v9  ;;  %vm426_vm8 = vcmask 1040384   ;;  %vm535_vm9 = vcmask 64512   ;;  %vm1599_vm10 = vcmask 1041409  }
  0x20   :  { %2102 = vmatpush3.bf16.msra.mxu0 %v2336_v4  ;;  %2108 = vmatpush3.msra.mxu1 %v2562_v8  ;;  %v2599_v14 = vld [vmem:[%s3043_s5 + $0x50] sm:$0xff]  ;;  %v2606_v15 = vld [vmem:[%s3043_s5 + $0x48] sm:$0xff]  ;;  %v2613_v16 = vld [vmem:[%s3043_s5 + $0x40] sm:$0xff]  ;;  %vm1601_vm11 = vcmask 1042434   ;;  %vm1603_vm12 = vcmask 1043459   ;;  %vm1605_vm13 = vcmask 1044484  }
  0x21   :  { %2142 = vmatprep.subr.mxu0 %v2389_v9  ;;  %2109 = vmatprep.subr.mxu1 %v2389_v9  ;;  %v2620_v17 = vld [vmem:[%s3043_s5 + $0x38] sm:$0xff]  ;;  %v2627_v18 = vld [vmem:[%s3043_s5 + $0x30] sm:$0xff]  ;;  %v2633_v19 = vld [vmem:[%s3043_s5 + $0x28] sm:$0xff]  ;;  %vm1607_vm14 = vcmask 1045509   ;;  %vm1609_vm15 = vcmask 1046534   ;;  %vm1611_vm1 = vcmask 1047559  }
  0x22   :  { %2110 = vmatpush3.msra.mxu1 %v2571_v10  ;;  %v2639_v20 = vld [vmem:[%s3043_s5 + $0x20] sm:$0xff]  ;;  %v2650_v21 = vld [vmem:[%s3043_s5 + $0x18] sm:$0xff]  ;;  %v2657_v22 = vld [vmem:[%s3043_s5 + $0x10] sm:$0xff] }
  0x23   :  { %2104 = vmatmul.mubr.msk.bf16.vlgmr.msra.gmra.mxu0 %vm138_vm0, %v1843_v7  ;;  %2111 = vmatprep.subr.mxu1 %v2389_v9  ;;  %v2664_v23 = vld [vmem:[%s3043_s5 + $0x8] sm:$0xff]  ;;  %v2671_v24 = vld [vmem:[%s3043_s5] sm:$0xff]  ;;  %v2337_v7 = vld [vmem:[%s3040_s2 + $0x38] sm:$0xff]  }
  0x24   :  { %2112 = vmatpush3.msra.mxu1 %v2578_v11  ;;  %2144 = vmatprep.mubr.msk.f32.mxu0 %vm2390_vm7, %v2389_v9  ;;  %v2700_v6 = vld [vmem:[%s3044_s6] sm:$0xff]  ;;  %v2357_v31 = vld [vmem:[%s3040_s2 + $0xa8] sm:$0xff]  }
  0x25   :  { %2113 = vmatprep.subr.mxu1 %v2389_v9  ;;  %2143 = vmatpush3.msra.mxu0 %v2700_v6 }
  0x26   :  { %2114 = vmatpush3.msra.mxu1 %v2585_v12 }
  0x27   :  { %2115 = vmatprep.subr.mxu1 %v2389_v9 }
  0x28   :  { %2116 = vmatpush3.msra.mxu1 %v2592_v13 }
  0x29   :  { %2117 = vmatprep.subr.mxu1 %v2389_v9 }
  0x2a   :  { %2118 = vmatpush3.msra.mxu1 %v2599_v14 }
  0x2b   :  { %2119 = vmatprep.subr.mxu1 %v2389_v9 }
  0x2c   :  { %2120 = vmatpush3.msra.mxu1 %v2606_v15 }
  0x2d   :  { %2121 = vmatprep.subr.mxu1 %v2389_v9 }
  0x2e   :  { %2122 = vmatpush3.msra.mxu1 %v2613_v16 }
  0x2f   :  { %2123 = vmatprep.subr.mxu1 %v2389_v9 }
  0x30   :  { %2124 = vmatpush3.msra.mxu1 %v2620_v17 }
  0x31   :  { %2125 = vmatprep.subr.mxu1 %v2389_v9 }
  0x32   :  { %2126 = vmatpush3.msra.mxu1 %v2627_v18 }
  0x33   :  { %2127 = vmatprep.subr.mxu1 %v2389_v9 }
  0x34   :  { %2128 = vmatpush3.msra.mxu1 %v2633_v19 }
  0x35   :  { %2129 = vmatprep.subr.mxu1 %v2389_v9 }
  0x36   :  { %2130 = vmatpush3.msra.mxu1 %v2639_v20 }
  0x37   :  { %2131 = vmatprep.subr.mxu1 %v2389_v9 }
  0x38   :  { %2132 = vmatpush3.msra.mxu1 %v2650_v21 }
  0x39   :  { %2133 = vmatprep.subr.mxu1 %v2389_v9 }
  0x3a   :  { %2134 = vmatpush3.msra.mxu1 %v2657_v22 }
  0x3b   :  { %2135 = vmatprep.subr.mxu1 %v2389_v9 }
  0x3c   :  { %2136 = vmatpush3.msra.mxu1 %v2664_v23 }
  0x3d   :  { %2137 = vmatprep.subr.mxu1 %v2389_v9 }
  0x3e   :  { %2138 = vmatpush3.msra.mxu1 %v2671_v24 }
  0x3f   :  { %2167 = vmatprep.subr.bf16.mxu1 %v2337_v7 }
  0xd3   :  { %v2081_v25 = vpop.f32.mrf.mxu0  ;;  %v2093_v26 = vpop.f32.mrf.mxu1 }
  0xd4   :  { %v277_v38 = vadd.f32 %v2093_v26, %v2081_v25  ;;  %v2338_v25 = vld [vmem:[%s3040_s2 + $0x30] sm:$0xff]  }
  0xd5   :  { %v179_v27 = vpop.f32.mrf.mxu0  ;;  %v268_v28 = vpop.f32.mrf.mxu1 }
  0xd6   :  { %v269_v36 = vadd.f32 %v268_v28, %v179_v27 }
  0xd7   :  { %v2082_v29 = vpop.f32.mrf.mxu0  ;;  %v2094_v30 = vpop.f32.mrf.mxu1 }
  0xd8   :  { %v280_v42 = vadd.f32 %v2094_v30, %v2082_v29 }
  0xd9   :  { %v182_v32 = vpop.f32.mrf.mxu0  ;;  %v271_v34 = vpop.f32.mrf.mxu1 }
  0xda   :  { %v272_v39 = vadd.f32 %v271_v34, %v182_v32 }
  0xe3   :  { %v2105_v33 = vpop.f32.mrf.mxu0 }
  0xe4   :  { %v2678_v43 = vadd.f32 %v2105_v33, %v277_v38  ;;  %v527_v38 = vld [vmem:[%s3041_s3 + $0x1] sm:$0x1] }
  0xe5   :  { %v385_v35 = vpop.f32.mrf.mxu0 }
  0xe6   :  { %v2676_v40 = vadd.f32 %v385_v35, %v269_v36  ;;  %v415_v49 = vmul.f32 %v2678_v43, %v2678_v43  ;;  %v520_v35 = vld [vmem:[%s3041_s3] sm:$0x1] }
  0xe7   :  { %v2106_v37 = vpop.f32.mrf.mxu0 }
  0xe8   :  { %v413_v45 = vmul.f32 %v2676_v40, %v2676_v40  ;;  %v2684_v46 = vadd.f32 %v2106_v37, %v280_v42 }
  0xe9   :  { %v388_v41 = vpop.f32.mrf.mxu0 }
  0xea   :  { %v2680_v44 = vadd.f32 %v388_v41, %v272_v39  ;;  %v416_v53 = vmul.f32 %v2684_v46, %v2684_v46 }
  0xec   :  { %v404_v47 = vadd.f32 %v2680_v44, %v2676_v40  ;;  %v414_v48 = vmul.f32 %v2680_v44, %v2680_v44 }
  0xee   :  { %v405_v51 = vadd.f32 %v404_v47, %v2678_v43  ;;  %v417_v52 = vadd.f32 %v414_v48, %v413_v45  ;;  %v2339_v47 = vld [vmem:[%s3040_s2 + $0x78] sm:$0xff]   ;;  %v2340_v48 = vld [vmem:[%s3040_s2 + $0x28] sm:$0xff]  }
  0xef   :  { %2147 = vmatprep.subr.bf16.mxu0 %v2339_v47 }
  0xf0   :  { %v406_v54 = vadd.f32 %v405_v51, %v2684_v46  ;;  %v418_v55 = vadd.f32 %v417_v52, %v415_v49  ;;  %v2341_v49 = vld [vmem:[%s3040_s2 + $0x70] sm:$0xff]   ;;  %v2342_v51 = vld [vmem:[%s3040_s2 + $0x20] sm:$0xff]   ;;  %v2343_v52 = vld [vmem:[%s3040_s2 + $0x68] sm:$0xff]  }
  0xf2   :  { %v407_v56 = vrot.slane %v406_v54, 4  ;;  %v419_v57 = vadd.f32 %v418_v55, %v416_v53  ;;  %v2344_v53 = vld [vmem:[%s3040_s2 + $0x18] sm:$0xff]   ;;  %v2346_v55 = vld [vmem:[%s3040_s2 + $0x10] sm:$0xff]  }
  0xf4   :  { %v408_v58 = vadd.f32 %v407_v56, %v406_v54  ;;  %v420_v59 = vrot.slane %v419_v57, 4  ;;  %v2345_v54 = vld [vmem:[%s3040_s2 + $0x60] sm:$0xff]   ;;  %v2347_v56 = vld [vmem:[%s3040_s2 + $0x58] sm:$0xff]  }
  0xf6   :  { %v409_v60 = vrot.slane %v408_v58, 2  ;;  %v421_v61 = vadd.f32 %v420_v59, %v419_v57  ;;  %v2348_v57 = vld [vmem:[%s3040_s2 + $0x8] sm:$0xff]   ;;  %v2350_v59 = vld [vmem:[%s3040_s2] sm:$0xff]  }
  0xf8   :  { %v410_v62 = vadd.f32 %v409_v60, %v408_v58  ;;  %v422_v63 = vrot.slane %v421_v61, 2  ;;  %v2349_v58 = vld [vmem:[%s3040_s2 + $0x50] sm:$0xff]   ;;  %v2352_v60 = vld [vmem:[%s3040_s2 + $0x48] sm:$0xff]  }
  0xfa   :  { %v411_v0 = vrot.slane %v410_v62, 1  ;;  %v423_v1 = vadd.f32 %v422_v63, %v421_v61  ;;  %v2354_v61 = vld [vmem:[%s3040_s2 + $0x40] sm:$0xff]   ;;  %v609_v63 = vlaneseq }
  0xfc   :  { %v424_v2 = vrot.slane %v423_v1, 1  ;;  %v412_v3 = vadd.f32 %v411_v0, %v410_v62  ;;  %v2763_v62 = vld [vmem:[%s3040_s2 + $0xb8] sm:$0xff]   ;;  %v2766_v0 = vshrl.u32 %v609_v63, 7 }
  0xfe   :  { %v425_v4 = vadd.f32 %v424_v2, %v423_v1  ;;  %v2769_v1 = vsub.s32 0, %v2766_v0  ;;  %v619_v2 = vsub.s32 1, %v2766_v0 }
 0x100   :  { %v427_v5 = vsel %vm426_vm8, %v412_v3, %v425_v4 }
 0x101   :  { %2140 = vmatmul.mubr.f32.vlgmr.msra.gmra.mxu1 %v427_v5 }
 0x102   :  { %2168 = vmatpush3.bf16.msra.mxu1 %v2337_v7 }
 0x103   :  { %2169 = vmatprep.subr.bf16.mxu1 %v2338_v25 }
 0x106   :  { %2170 = vmatpush3.bf16.msra.mxu1 %v2338_v25 }
 0x107   :  { %2171 = vmatprep.subr.bf16.mxu1 %v2340_v48 }
 0x10a   :  { %2172 = vmatpush3.bf16.msra.mxu1 %v2340_v48 }
 0x10b   :  { %2173 = vmatprep.subr.bf16.mxu1 %v2342_v51 }
 0x10e   :  { %2174 = vmatpush3.bf16.msra.mxu1 %v2342_v51 }
 0x10f   :  { %2175 = vmatprep.subr.bf16.mxu1 %v2344_v53 }
 0x112   :  { %2176 = vmatpush3.bf16.msra.mxu1 %v2344_v53 }
 0x113   :  { %2177 = vmatprep.subr.bf16.mxu1 %v2346_v55 }
 0x116   :  { %2178 = vmatpush3.bf16.msra.mxu1 %v2346_v55 }
 0x117   :  { %2179 = vmatprep.subr.bf16.mxu1 %v2348_v57 }
 0x11a   :  { %2180 = vmatpush3.bf16.msra.mxu1 %v2348_v57 }
 0x11b   :  { %2181 = vmatprep.subr.bf16.mxu1 %v2350_v59 }
 0x11e   :  { %2182 = vmatpush3.bf16.msra.mxu1 %v2350_v59 }
 0x11f   :  { %2207 = vmatprep.subr.mxu1 %v2389_v9 }
 0x1c1   :  { %v510_v26 = vpop.f32.mrf.mxu1 }
 0x1c2   :  { %v514_v27 = vmul.f32 0.001953125, %v510_v26 }
 0x1c3   :  { %v2141_v28 = vpop.f32.mrf.mxu1 }
 0x1c4   :  { %v515_v29 = vmul.f32 %v514_v27, %v514_v27 }
 0x1c6   :  { %v517_v30 = vrot.slane %v515_v29, 7 }
 0x1c8   :  { %v519_v32 = vsub.f32 %v514_v27, %v517_v30 }
 0x1ca   :  { %v521_v33 = vadd.f32 1e-05, %v519_v32 }
 0x1cc   :  { %2363 = vrsqrt.f32 %v521_v33 }
 0x1d9   :  { %v2364_v34 = vpop.eup %2363 }
 0x1da   :  { %v524_v36 = vrot.slane %v2364_v34, 1 }
 0x1dc   :  { %v526_v37 = vmul.f32 %v524_v36, %v520_v35 }
 0x1de   :  { %v528_v39 = vmul.f32 %v526_v37, %v514_v27 }
 0x1e0   :  { %v529_v41 = vsub.f32 %v527_v38, %v528_v39 }
 0x1e2   :  { %v531_v42 = vrot.slane %v529_v41, 7 }
 0x1e4   :  { %v533_v45 = vsel %vm426_vm8, %v526_v37, %v531_v42 }
 0x1e5   :  { %2145 = vmatmul.mubr.msk.f32.vlgmr.msra.gmra.mxu0 %vm535_vm9, %v533_v45 }
 0x1e6   :  { %2148 = vmatpush3.bf16.msra.mxu0 %v2339_v47 }
 0x1e7   :  { %2149 = vmatprep.subr.bf16.mxu0 %v2341_v49 }
 0x1ea   :  { %2150 = vmatpush3.bf16.msra.mxu0 %v2341_v49 }
 0x1eb   :  { %2151 = vmatprep.subr.bf16.mxu0 %v2343_v52 }
 0x1ee   :  { %2152 = vmatpush3.bf16.msra.mxu0 %v2343_v52 }
 0x1ef   :  { %2153 = vmatprep.subr.bf16.mxu0 %v2345_v54 }
 0x1f2   :  { %2154 = vmatpush3.bf16.msra.mxu0 %v2345_v54 }
 0x1f3   :  { %2155 = vmatprep.subr.bf16.mxu0 %v2347_v56 }
 0x1f6   :  { %2156 = vmatpush3.bf16.msra.mxu0 %v2347_v56 }
 0x1f7   :  { %2157 = vmatprep.subr.bf16.mxu0 %v2349_v58 }
 0x1fa   :  { %2158 = vmatpush3.bf16.msra.mxu0 %v2349_v58 }
 0x1fb   :  { %2159 = vmatprep.subr.bf16.mxu0 %v2352_v60 }
 0x1fe   :  { %2160 = vmatpush3.bf16.msra.mxu0 %v2352_v60 }
 0x1ff   :  { %2161 = vmatprep.subr.bf16.mxu0 %v2354_v61 }
 0x202   :  { %2162 = vmatpush3.bf16.msra.mxu0 %v2354_v61 }
 0x203   :  { %2187 = vmatprep.subr.bf16.mxu0 %v2763_v62 }
 0x2a5   :  { %v605_v3 = vpop.f32.mrf.mxu0 }
 0x2a6   :  { %v612_v4 = vrot.slane %v605_v3, %v2769_v1  ;;  %v620_v5 = vrot.slane %v605_v3, %v619_v2 }
 0x2a7   :  { %v2146_v7 = vpop.f32.mrf.mxu0 }
 0x2a8   :  { %v613_v25 = vmul.f32 %v612_v4, %v2676_v40  ;;  %v614_v26 = vmul.f32 %v612_v4, %v2680_v44  ;;  %v615_v27 = vmul.f32 %v612_v4, %v2678_v43  ;;  %v616_v28 = vmul.f32 %v612_v4, %v2684_v46 }
 0x2aa   :  { %v621_v29 = vadd.f32 %v620_v5, %v613_v25  ;;  %v622_v30 = vadd.f32 %v620_v5, %v614_v26  ;;  %v623_v32 = vadd.f32 %v620_v5, %v615_v27  ;;  %v624_v33 = vadd.f32 %v620_v5, %v616_v28 }
 0x2ac   :  { %v625_v34 = vmax.f32 %v621_v29, 0.0  ;;  %v626_v35 = vmax.f32 %v622_v30, 0.0  ;;  %v627_v36 = vmax.f32 %v623_v32, 0.0  ;;  %v628_v37 = vmax.f32 %v624_v33, 0.0 }
 0x2ae   :  { %v633_v38 = vrot.slane %v625_v34, 7  ;;  %v634_v39 = vrot.slane %v626_v35, 7  ;;  %v636_v41 = vrot.slane %v627_v36, 7  ;;  %v637_v42 = vrot.slane %v628_v37, 7 }
 0x2b0   :  { %v635_v40 = vsel %vm426_vm8, %v633_v38, %v634_v39  ;;  %v638_v44 = vsel %vm426_vm8, %v636_v41, %v637_v42  ;;  %v645_v43 = vsel %vm426_vm8, 0.0, %v633_v38  ;;  %v646_v46 = vsel %vm426_vm8, 0.0, %v636_v41 }
 0x2b1   :  { %v647_v45 = vsel %vm426_vm8, %v634_v39, 0.0  ;;  %v648_v47 = vsel %vm426_vm8, %v637_v42, 0.0  ;;  %v1941_v48 = vpack.c.bf16 %v646_v46, %v646_v46  ;;  %v1942_v49 = vpack.c.bf16 %v638_v44, %v638_v44 }
 0x2b2   :  { %v1940_v51 = vpack.c.bf16 %v647_v45, %v647_v45  ;;  %v1943_v52 = vpack.c.bf16 %v648_v47, %v648_v47  ;;  %v1947_v53 = vpack.c.bf16 %v635_v40, %v645_v43 }
 0x2b3   :  { %678 = vst [vmem:[#allocation2 + $0xc] sm:$0xf] %v1941_v48  ;;  %679 = vst [vmem:[#allocation2 + $0x10] sm:$0xf] %v1942_v49 }
 0x2b4   :  { %1948 = vst [vmem:[#allocation2] sm:$0xff] %v1947_v53   ;;  %677 = vst [vmem:[#allocation2 + $0x8] sm:$0x1] %v1940_v51 }
 0x2b5   :  { %680 = vst [vmem:[#allocation2 + $0x14] sm:$0x1] %v1943_v52 }
 0x2ba   :  { %v683_v54 = vld [vmem:[#allocation2 + $0xc] sm:$0xf]  ;;  %v2785_v55 = vld [vmem:[#allocation2 + $0x10] sm:$0xf] }
 0x2bb   :  { %v681_v56 = vld [vmem:[#allocation2] sm:$0xf]  ;;  %v682_v57 = vld [vmem:[#allocation2 + $0x4] sm:$0xf]  ;;  %v728_v58 = vshrl.u32 %v683_v54, 16  ;;  %v731_v59 = vshll.u32 %v683_v54, 16  ;;  %v1884_v60 = vcombine.low %v683_v54, %v2785_v55 }
 0x2bc   :  { %v704_v61 = vshrl.u32 %v681_v56, 16  ;;  %v707_v63 = vshll.u32 %v681_v56, 16  ;;  %v717_v3 = vshrl.u32 %v682_v57, 16  ;;  %v1883_v4 = vcombine.low %v681_v56, %v682_v57  ;;  %v701_v5 = vld [vmem:[#allocation2 + $0x8] sm:$0x1] }
 0x2bd   :  { %v730_v7 = vrot.slane %v728_v58, 4  ;;  %v733_v25 = vrot.slane %v731_v59, 5  ;;  %v741_v26 = vshrl.u32 %v2785_v55, 16  ;;  %v713_v27 = vshll.u32 %v682_v57, 16  ;;  %v2789_v28 = vld [vmem:[#allocation2 + $0x14] sm:$0x1] }
 0x2be   :  { %v706_v29 = vrot.slane %v704_v61, 4  ;;  %v709_v30 = vrot.slane %v707_v63, 5  ;;  %2183 = vmatprep.mubr.bf16.mxu1 %v1883_v4  ;;  %v719_v32 = vrot.slane %v717_v3, 4  ;;  %v723_v33 = vshll.u32 %v701_v5, 16  ;;  %v982_v44 = vld [vmem:[#allocation2] sm:$0xe] }
 0x2bf   :  { %2184 = vmatmul.mubr.bf16.vlgmr.msra.gmra.mxu1 %v1884_v60  ;;  %v715_v34 = vrot.slane %v713_v27, 5  ;;  %v734_v35 = vor.u32 %v733_v25, %v730_v7  ;;  %v737_v36 = vshll.u32 %v2785_v55, 16  ;;  %v743_v37 = vrot.slane %v741_v26, 4  ;;  %v2356_v61 = vld [vmem:[%s3040_s2 + $0xb0] sm:$0xff]  }
 0x2c0   :  { %v710_v38 = vor.u32 %v709_v30, %v706_v29  ;;  %v747_v39 = vshll.u32 %v2789_v28, 16  ;;  %2208 = vmatpush3.msra.mxu1 %v2562_v8  ;;  %2239 = vmatprep.mubr.msk.f32.mxu1 %vm2390_vm7, %v2389_v9  ;;  %v990_v43 = vrot.slane %v682_v57, 5  ;;  %v725_v47 = vrot.slane %v723_v33, 5 }
 0x2c1   :  { %v720_v41 = vor.u32 %v719_v32, %v715_v34  ;;  %v735_v42 = vrot.slane %v734_v35, 4  ;;  %v739_v40 = vrot.slane %v737_v36, 5  ;;  %2209 = vmatprep.subr.mxu1 %v2389_v9  ;;  %v1893_v49 = vrot.slane %v982_v44, 9 }
 0x2c2   :  { %v711_v46 = vrot.slane %v710_v38, 4  ;;  %2210 = vmatpush3.msra.mxu1 %v2571_v10  ;;  %v992_v51 = vrot.slane %v990_v43, 4  ;;  %v993_v52 = vrot.slane %v701_v5, 5  ;;  %v749_v56 = vrot.slane %v747_v39, 5 }
 0x2c3   :  { %v721_v45 = vrot.slane %v720_v41, 4  ;;  %v744_v48 = vor.u32 %v743_v37, %v739_v40  ;;  %2211 = vmatprep.subr.mxu1 %v2389_v9  ;;  %v740_v54 = vsel %vm2508_vm5, %v735_v42, %v739_v40  ;;  %v991_v60 = vsel %vm2525_vm6, %v1893_v49, %v990_v43 }
 0x2c4   :  { %v716_v8 = vsel %vm2508_vm5, %v711_v46, %v715_v34  ;;  %2212 = vmatpush3.msra.mxu1 %v2578_v11  ;;  %v994_v58 = vsel %vm2525_vm6, %v992_v51, %v993_v52 }
 0x2c5   :  { %v726_v53 = vsel %vm2508_vm5, %v721_v45, %v725_v47  ;;  %v745_v10 = vrot.slane %v744_v48, 4  ;;  %2213 = vmatprep.subr.mxu1 %v2389_v9  ;;  %v1911_v63 = vcombine.low %v991_v60, %v994_v58  ;;  %v1712_v60 = vld [vmem:[%s3046_s8 + $0x78] sm:$0xff] }
 0x2c6   :  { %v1873_v57 = vcombine.low %v716_v8, %v726_v53  ;;  %2214 = vmatpush3.msra.mxu1 %v2585_v12  ;;  %v2358_v12 = vld [vmem:[%s3040_s2 + $0xa0] sm:$0xff]  }
 0x2c7   :  { %v750_v59 = vsel %vm2508_vm5, %v745_v10, %v749_v56  ;;  %2215 = vmatprep.subr.mxu1 %v2389_v9 }
 0x2c8   :  { %2163 = vmatprep.mubr.bf16.mxu0 %v1873_v57  ;;  %v1874_v11 = vcombine.low %v740_v54, %v750_v59  ;;  %2216 = vmatpush3.msra.mxu1 %v2592_v13  ;;  %v2359_v13 = vld [vmem:[%s3040_s2 + $0x98] sm:$0xff]  }
 0x2c9   :  { %2217 = vmatprep.subr.mxu1 %v2389_v9 }
 0x2ca   :  { %2164 = vmatmul.mubr.bf16.vlgmr.msra.gmra.mxu0 %v1874_v11  ;;  %2218 = vmatpush3.msra.mxu1 %v2599_v14  ;;  %v2360_v14 = vld [vmem:[%s3040_s2 + $0x90] sm:$0xff]   ;;  %v1518_v11 = vld [vmem:[%s3045_s7 + $0x78] sm:$0xff] }
 0x2cb   :  { %2188 = vmatpush3.bf16.msra.mxu0 %v2763_v62  ;;  %2203 = vmatprep.mubr.bf16.mxu0 %v1911_v63  ;;  %v1710_v63 = vld [vmem:[%s3046_s8 + $0x68] sm:$0xff] }
 0x2cc   :  { %2189 = vmatprep.subr.bf16.mxu0 %v2356_v61  ;;  %2219 = vmatprep.subr.mxu1 %v2389_v9 }
 0x2cd   :  { %2220 = vmatpush3.msra.mxu1 %v2606_v15  ;;  %v2361_v15 = vld [vmem:[%s3040_s2 + $0x88] sm:$0xff]  }
 0x2ce   :  { %2221 = vmatprep.subr.mxu1 %v2389_v9 }
 0x2cf   :  { %2190 = vmatpush3.bf16.msra.mxu0 %v2356_v61  ;;  %2222 = vmatpush3.msra.mxu1 %v2613_v16  ;;  %v997_v16 = vrot.slane %v2785_v55, 5  ;;  %v1711_v61 = vld [vmem:[%s3046_s8 + $0x70] sm:$0xff] }
 0x2d0   :  { %2191 = vmatprep.subr.bf16.mxu0 %v2357_v31  ;;  %2223 = vmatprep.subr.mxu1 %v2389_v9 }
 0x2d1   :  { %2224 = vmatpush3.msra.mxu1 %v2620_v17  ;;  %v2362_v17 = vld [vmem:[%s3040_s2 + $0x80] sm:$0xff]  }
 0x2d2   :  { %2225 = vmatprep.subr.mxu1 %v2389_v9 }
 0x2d3   :  { %2192 = vmatpush3.bf16.msra.mxu0 %v2357_v31  ;;  %2226 = vmatpush3.msra.mxu1 %v2627_v18  ;;  %v983_v18 = vld [vmem:[#allocation2 + $0xc] sm:$0xe] }
 0x2d4   :  { %2193 = vmatprep.subr.bf16.mxu0 %v2358_v12  ;;  %2227 = vmatprep.subr.mxu1 %v2389_v9 }
 0x2d5   :  { %2228 = vmatpush3.msra.mxu1 %v2633_v19  ;;  %v999_v19 = vrot.slane %v997_v16, 4 }
 0x2d6   :  { %2229 = vmatprep.subr.mxu1 %v2389_v9 }
 0x2d7   :  { %2194 = vmatpush3.bf16.msra.mxu0 %v2358_v12  ;;  %2230 = vmatpush3.msra.mxu1 %v2639_v20  ;;  %v1894_v20 = vrot.slane %v983_v18, 9 }
 0x2d8   :  { %2195 = vmatprep.subr.bf16.mxu0 %v2359_v13  ;;  %2231 = vmatprep.subr.mxu1 %v2389_v9 }
 0x2d9   :  { %2232 = vmatpush3.msra.mxu1 %v2650_v21  ;;  %v1000_v21 = vrot.slane %v2789_v28, 5 }
 0x2da   :  { %2233 = vmatprep.subr.mxu1 %v2389_v9 }
 0x2db   :  { %2196 = vmatpush3.bf16.msra.mxu0 %v2359_v13  ;;  %2234 = vmatpush3.msra.mxu1 %v2657_v22  ;;  %v1001_v22 = vsel %vm2525_vm6, %v999_v19, %v1000_v21  ;;  %v1243_v19 = vld [vmem:[%s3042_s4] sm:$0x1] }
 0x2dc   :  { %2197 = vmatprep.subr.bf16.mxu0 %v2360_v14  ;;  %2235 = vmatprep.subr.mxu1 %v2389_v9 }
 0x2dd   :  { %2236 = vmatpush3.msra.mxu1 %v2664_v23  ;;  %v998_v23 = vsel %vm2525_vm6, %v1894_v20, %v997_v16 }
 0x2de   :  { %2237 = vmatprep.subr.mxu1 %v2389_v9 }
 0x2df   :  { %2198 = vmatpush3.bf16.msra.mxu0 %v2360_v14  ;;  %2238 = vmatpush3.msra.mxu1 %v2671_v24  ;;  %v1912_v24 = vcombine.low %v998_v23, %v1001_v22  ;;  %v1250_v22 = vld [vmem:[%s3042_s4 + $0x1] sm:$0x1] }
 0x2e0   :  { %2199 = vmatprep.subr.bf16.mxu0 %v2361_v15  ;;  %2282 = vmatprep.subr.mxu1 %v1712_v60 }
 0x2e3   :  { %2200 = vmatpush3.bf16.msra.mxu0 %v2361_v15 }
 0x2e4   :  { %2201 = vmatprep.subr.bf16.mxu0 %v2362_v17 }
 0x2e7   :  { %2202 = vmatpush3.bf16.msra.mxu0 %v2362_v17 }
 0x2e8   :  { %2242 = vmatprep.subr.mxu0 %v2389_v9 }
 0x2ea   :  { %2204 = vmatmul.mubr.bf16.vlgmr.msra.gmra.mxu0 %v1912_v24 }
 0x2eb   :  { %2243 = vmatpush3.msra.mxu0 %v2700_v6  ;;  %2244 = vmatprep.mubr.msk.f32.mxu0 %vm2390_vm7, %v2389_v9 }
 0x2ec   :  { %2247 = vmatprep.subr.mxu0 %v1518_v11 }
 0x37f   :  { %v2185_v3 = vpop.f32.mrf.mxu1 }
 0x381   :  { %v967_v5 = vpop.f32.mrf.mxu1 }
 0x383   :  { %v2186_v25 = vpop.f32.mrf.mxu1 }
 0x385   :  { %v970_v28 = vpop.f32.mrf.mxu1 }
 0x38a   :  { %v2165_v62 = vpop.f32.mrf.mxu0 }
 0x38b   :  { %v976_v30 = vadd.f32 %v2185_v3, %v2165_v62  ;;  %v1517_v3 = vld [vmem:[%s3045_s7 + $0x70] sm:$0xff] }
 0x38c   :  { %v858_v55 = vpop.f32.mrf.mxu0 }
 0x38d   :  { %v968_v50 = vadd.f32 %v967_v5, %v858_v55  ;;  %v1515_v5 = vld [vmem:[%s3045_s7 + $0x60] sm:$0xff] }
 0x38e   :  { %v2166_v4 = vpop.f32.mrf.mxu0 }
 0x38f   :  { %v979_v34 = vadd.f32 %v2186_v25, %v2166_v4  ;;  %v1516_v4 = vld [vmem:[%s3045_s7 + $0x68] sm:$0xff]  ;;  %v1514_v25 = vld [vmem:[%s3045_s7 + $0x58] sm:$0xff] }
 0x390   :  { %v861_v7 = vpop.f32.mrf.mxu0 }
 0x391   :  { %v971_v32 = vadd.f32 %v970_v28, %v861_v7  ;;  %v1709_v7 = vld [vmem:[%s3046_s8 + $0x60] sm:$0xff]  ;;  %v1512_v28 = vld [vmem:[%s3045_s7 + $0x48] sm:$0xff] }
 0x3aa   :  { %v2205_v26 = vpop.f32.mrf.mxu0 }
 0x3ab   :  { %v2872_v35 = vadd.f32 %v2205_v26, %v976_v30  ;;  %v1708_v26 = vld [vmem:[%s3046_s8 + $0x58] sm:$0xff]  ;;  %v1511_v30 = vld [vmem:[%s3045_s7 + $0x40] sm:$0xff] }
 0x3ac   :  { %v1109_v27 = vpop.f32.mrf.mxu0 }
 0x3ad   :  { %v2870_v33 = vadd.f32 %v1109_v27, %v968_v50  ;;  %v1139_v41 = vmul.f32 %v2872_v35, %v2872_v35  ;;  %v1513_v27 = vld [vmem:[%s3045_s7 + $0x50] sm:$0xff] }
 0x3ae   :  { %v2206_v29 = vpop.f32.mrf.mxu0  ;;  %v1707_v50 = vld [vmem:[%s3046_s8 + $0x50] sm:$0xff] }
 0x3af   :  { %v1137_v36 = vmul.f32 %v2870_v33, %v2870_v33  ;;  %v2878_v37 = vadd.f32 %v2206_v29, %v979_v34  ;;  %v1706_v29 = vld [vmem:[%s3046_s8 + $0x48] sm:$0xff]  ;;  %v1704_v34 = vld [vmem:[%s3046_s8 + $0x38] sm:$0xff] }
 0x3b0   :  { %v1112_v6 = vpop.f32.mrf.mxu0 }
 0x3b1   :  { %v2874_v9 = vadd.f32 %v1112_v6, %v971_v32  ;;  %v1140_v44 = vmul.f32 %v2878_v37, %v2878_v37  ;;  %v1705_v32 = vld [vmem:[%s3046_s8 + $0x40] sm:$0xff]  ;;  %v1510_v6 = vld [vmem:[%s3045_s7 + $0x38] sm:$0xff] }
 0x3b3   :  { %v1128_v38 = vadd.f32 %v2874_v9, %v2870_v33  ;;  %v1138_v39 = vmul.f32 %v2874_v9, %v2874_v9 }
 0x3b5   :  { %v1129_v42 = vadd.f32 %v1128_v38, %v2872_v35  ;;  %v1141_v40 = vadd.f32 %v1138_v39, %v1137_v36  ;;  %v1509_v36 = vld [vmem:[%s3045_s7 + $0x30] sm:$0xff]  ;;  %v1508_v39 = vld [vmem:[%s3045_s7 + $0x28] sm:$0xff] }
 0x3b6   :  { %v1703_v38 = vld [vmem:[%s3046_s8 + $0x30] sm:$0xff] }
 0x3b7   :  { %v1130_v43 = vadd.f32 %v1129_v42, %v2878_v37  ;;  %v1142_v46 = vadd.f32 %v1141_v40, %v1139_v41  ;;  %v1702_v41 = vld [vmem:[%s3046_s8 + $0x28] sm:$0xff]  ;;  %v1507_v42 = vld [vmem:[%s3045_s7 + $0x20] sm:$0xff] }
 0x3b8   :  { %v1701_v40 = vld [vmem:[%s3046_s8 + $0x20] sm:$0xff] }
 0x3b9   :  { %v1131_v45 = vrot.slane %v1130_v43, 4  ;;  %v1143_v47 = vadd.f32 %v1142_v46, %v1140_v44  ;;  %v1506_v44 = vld [vmem:[%s3045_s7 + $0x18] sm:$0xff]  ;;  %v1505_v46 = vld [vmem:[%s3045_s7 + $0x10] sm:$0xff] }
 0x3bb   :  { %v1132_v48 = vadd.f32 %v1131_v45, %v1130_v43  ;;  %v1144_v8 = vrot.slane %v1143_v47, 4  ;;  %v1700_v43 = vld [vmem:[%s3046_s8 + $0x18] sm:$0xff]  ;;  %v1699_v45 = vld [vmem:[%s3046_s8 + $0x10] sm:$0xff] }
 0x3bd   :  { %v1133_v49 = vrot.slane %v1132_v48, 2  ;;  %v1145_v51 = vadd.f32 %v1144_v8, %v1143_v47  ;;  %v1504_v47 = vld [vmem:[%s3045_s7 + $0x8] sm:$0xff]  ;;  %v1503_v8 = vld [vmem:[%s3045_s7] sm:$0xff]  ;;  %s2392_s7 = smov [#allocation3]  }
 0x3bf   :  { %v1134_v52 = vadd.f32 %v1133_v49, %v1132_v48  ;;  %v1146_v53 = vrot.slane %v1145_v51, 2  ;;  %v1698_v48 = vld [vmem:[%s3046_s8 + $0x8] sm:$0xff]  ;;  %v1697_v49 = vld [vmem:[%s3046_s8] sm:$0xff]  ;;  %s1797_s8 = sshll.u32 %s2392_s7, 4  ;;  %s1798_s8 = int_to_ptr.vmem [resolvable:$true] %s1797_s8 }
 0x3c0   :  { %s2367_s24 = scalar_lea.vmem %s1798_s8, 256  ;;  %p2372_p1 = scmp.lt.s32.totalorder %s1798_s8, %s1798_s8 }
 0x3c1   :  { %v1135_v54 = vrot.slane %v1134_v52, 1  ;;  %v1147_v10 = vadd.f32 %v1146_v53, %v1145_v51  ;;  %v2391_v51 = vmov 1983009808   ;;  %p2368_p0 = scmp.ne.s32.totalorder %s1798_s8, %s2367_s24  ;;  %p2373_p2 = scmp.lt.s32.totalorder %s2367_s24, %s2367_s24 }
 0x3c3   :  { %v1148_v56 = vrot.slane %v1147_v10, 1  ;;  %v1136_v57 = vadd.f32 %v1135_v54, %v1134_v52  ;;  %v1357_v52 = vunpack.c.l.s4 %v2391_v51  ;;  %p2374_p3 = por %p2373_p2, %p2372_p1 }
 0x3c5   :  { %v1149_v58 = vadd.f32 %v1148_v56, %v1147_v10  ;;  %v1358_v53 = vunpack.c.0.s8 %v1357_v52  ;;  %p2375_p4 = pnand %p2374_p3, %p2368_p0 }
 0x3c7   :  { %v1150_v59 = vsel %vm426_vm8, %v1136_v57, %v1149_v58 }
 0x3c8   :  { %2240 = vmatmul.mubr.f32.vlgmr.msra.gmra.mxu1 %v1150_v59 }
 0x3c9   :  { %2283 = vmatpush3.msra.mxu1 %v1712_v60 }
 0x3ca   :  { %2284 = vmatprep.subr.mxu1 %v1711_v61 }
 0x3cb   :  { %2285 = vmatpush3.msra.mxu1 %v1711_v61  ;;  %v1361_v61 = vsub.s32 %v1358_v53, %v2766_v0 }
 0x3cc   :  { %2286 = vmatprep.subr.mxu1 %v1710_v63 }
 0x3cd   :  { %2287 = vmatpush3.msra.mxu1 %v1710_v63 }
 0x3ce   :  { %2288 = vmatprep.subr.mxu1 %v1709_v7 }
 0x3cf   :  { %2289 = vmatpush3.msra.mxu1 %v1709_v7 }
 0x3d0   :  { %2290 = vmatprep.subr.mxu1 %v1708_v26 }
 0x3d1   :  { %2291 = vmatpush3.msra.mxu1 %v1708_v26 }
 0x3d2   :  { %2292 = vmatprep.subr.mxu1 %v1707_v50 }
 0x3d3   :  { %2293 = vmatpush3.msra.mxu1 %v1707_v50 }
 0x3d4   :  { %2294 = vmatprep.subr.mxu1 %v1706_v29 }
 0x3d5   :  { %2295 = vmatpush3.msra.mxu1 %v1706_v29 }
 0x3d6   :  { %2296 = vmatprep.subr.mxu1 %v1705_v32 }
 0x3d7   :  { %2297 = vmatpush3.msra.mxu1 %v1705_v32 }
 0x3d8   :  { %2298 = vmatprep.subr.mxu1 %v1704_v34 }
 0x3d9   :  { %2299 = vmatpush3.msra.mxu1 %v1704_v34 }
 0x3da   :  { %2300 = vmatprep.subr.mxu1 %v1703_v38 }
 0x3db   :  { %2301 = vmatpush3.msra.mxu1 %v1703_v38 }
 0x3dc   :  { %2302 = vmatprep.subr.mxu1 %v1702_v41 }
 0x3dd   :  { %2303 = vmatpush3.msra.mxu1 %v1702_v41 }
 0x3de   :  { %2304 = vmatprep.subr.mxu1 %v1701_v40 }
 0x3df   :  { %2305 = vmatpush3.msra.mxu1 %v1701_v40 }
 0x3e0   :  { %2306 = vmatprep.subr.mxu1 %v1700_v43 }
 0x3e1   :  { %2307 = vmatpush3.msra.mxu1 %v1700_v43 }
 0x3e2   :  { %2308 = vmatprep.subr.mxu1 %v1699_v45 }
 0x3e3   :  { %2309 = vmatpush3.msra.mxu1 %v1699_v45 }
 0x3e4   :  { %2310 = vmatprep.subr.mxu1 %v1698_v48 }
 0x3e5   :  { %2311 = vmatpush3.msra.mxu1 %v1698_v48 }
 0x3e6   :  { %2312 = vmatprep.subr.mxu1 %v1697_v49 }
 0x3e7   :  { %2313 = vmatpush3.msra.mxu1 %v1697_v49 }
 0x488   :  { %v1233_v31 = vpop.f32.mrf.mxu1 }
 0x489   :  { %v1237_v12 = vmul.f32 0.001953125, %v1233_v31 }
 0x48a   :  { %v2241_v13 = vpop.f32.mrf.mxu1 }
 0x48b   :  { %v1238_v14 = vmul.f32 %v1237_v12, %v1237_v12 }
 0x48d   :  { %v1240_v15 = vrot.slane %v1238_v14, 7 }
 0x48f   :  { %v1242_v16 = vsub.f32 %v1237_v12, %v1240_v15 }
 0x491   :  { %v1244_v17 = vadd.f32 1e-05, %v1242_v16 }
 0x493   :  { %2365 = vrsqrt.f32 %v1244_v17 }
 0x4a0   :  { %v2366_v18 = vpop.eup %2365 }
 0x4a1   :  { %v1247_v20 = vrot.slane %v2366_v18, 1 }
 0x4a3   :  { %v1249_v21 = vmul.f32 %v1247_v20, %v1243_v19 }
 0x4a5   :  { %v1251_v23 = vmul.f32 %v1249_v21, %v1237_v12 }
 0x4a7   :  { %v1252_v24 = vsub.f32 %v1250_v22, %v1251_v23 }
 0x4a9   :  { %v1254_v62 = vrot.slane %v1252_v24, 7 }
 0x4ab   :  { %v1256_v55 = vsel %vm426_vm8, %v1249_v21, %v1254_v62 }
 0x4ac   :  { %2245 = vmatmul.mubr.msk.f32.vlgmr.msra.gmra.mxu0 %vm535_vm9, %v1256_v55 }
 0x4ad   :  { %2248 = vmatpush3.msra.mxu0 %v1518_v11 }
 0x4ae   :  { %2249 = vmatprep.subr.mxu0 %v1517_v3 }
 0x4af   :  { %2250 = vmatpush3.msra.mxu0 %v1517_v3 }
 0x4b0   :  { %2251 = vmatprep.subr.mxu0 %v1516_v4 }
 0x4b1   :  { %2252 = vmatpush3.msra.mxu0 %v1516_v4 }
 0x4b2   :  { %2253 = vmatprep.subr.mxu0 %v1515_v5 }
 0x4b3   :  { %2254 = vmatpush3.msra.mxu0 %v1515_v5 }
 0x4b4   :  { %2255 = vmatprep.subr.mxu0 %v1514_v25 }
 0x4b5   :  { %2256 = vmatpush3.msra.mxu0 %v1514_v25 }
 0x4b6   :  { %2257 = vmatprep.subr.mxu0 %v1513_v27 }
 0x4b7   :  { %2258 = vmatpush3.msra.mxu0 %v1513_v27 }
 0x4b8   :  { %2259 = vmatprep.subr.mxu0 %v1512_v28 }
 0x4b9   :  { %2260 = vmatpush3.msra.mxu0 %v1512_v28 }
 0x4ba   :  { %2261 = vmatprep.subr.mxu0 %v1511_v30 }
 0x4bb   :  { %2262 = vmatpush3.msra.mxu0 %v1511_v30 }
 0x4bc   :  { %2263 = vmatprep.subr.mxu0 %v1510_v6 }
 0x4bd   :  { %2264 = vmatpush3.msra.mxu0 %v1510_v6 }
 0x4be   :  { %2265 = vmatprep.subr.mxu0 %v1509_v36 }
 0x4bf   :  { %2266 = vmatpush3.msra.mxu0 %v1509_v36 }
 0x4c0   :  { %2267 = vmatprep.subr.mxu0 %v1508_v39 }
 0x4c1   :  { %2268 = vmatpush3.msra.mxu0 %v1508_v39 }
 0x4c2   :  { %2269 = vmatprep.subr.mxu0 %v1507_v42 }
 0x4c3   :  { %2270 = vmatpush3.msra.mxu0 %v1507_v42 }
 0x4c4   :  { %2271 = vmatprep.subr.mxu0 %v1506_v44 }
 0x4c5   :  { %2272 = vmatpush3.msra.mxu0 %v1506_v44 }
 0x4c6   :  { %2273 = vmatprep.subr.mxu0 %v1505_v46 }
 0x4c7   :  { %2274 = vmatpush3.msra.mxu0 %v1505_v46 }
 0x4c8   :  { %2275 = vmatprep.subr.mxu0 %v1504_v47 }
 0x4c9   :  { %2276 = vmatpush3.msra.mxu0 %v1504_v47 }
 0x4ca   :  { %2277 = vmatprep.subr.mxu0 %v1503_v8 }
 0x4cb   :  { %2278 = vmatpush3.msra.mxu0 %v1503_v8 }
 0x56c   :  { %v1327_v54 = vpop.f32.mrf.mxu0 }
 0x56d   :  { %v1334_v10 = vrot.slane %v1327_v54, %v2769_v1  ;;  %v1342_v56 = vrot.slane %v1327_v54, %v619_v2 }
 0x56e   :  { %v2246_v57 = vpop.f32.mrf.mxu0 }
 0x56f   :  { %v1335_v58 = vmul.f32 %v1334_v10, %v2870_v33  ;;  %v1336_v59 = vmul.f32 %v1334_v10, %v2874_v9  ;;  %v1337_v11 = vmul.f32 %v1334_v10, %v2872_v35  ;;  %v1338_v60 = vmul.f32 %v1334_v10, %v2878_v37 }
 0x571   :  { %v1343_v63 = vadd.f32 %v1342_v56, %v1335_v58  ;;  %v1344_v31 = vadd.f32 %v1342_v56, %v1336_v59  ;;  %v1345_v12 = vadd.f32 %v1342_v56, %v1337_v11  ;;  %v1346_v13 = vadd.f32 %v1342_v56, %v1338_v60 }
 0x573   :  { %v1347_v14 = vmax.f32 %v1343_v63, 0.0  ;;  %v1348_v15 = vmax.f32 %v1344_v31, 0.0  ;;  %v1349_v16 = vmax.f32 %v1345_v12, 0.0  ;;  %v1350_v17 = vmax.f32 %v1346_v13, 0.0 }
 0x575   :  { %v1355_v2 = vcombine.high %v1347_v14, %v1347_v14  ;;  %v1362_v18 = vrot.slane %v1347_v14, %v1361_v61  ;;  %v1372_v19 = vcombine.high %v1348_v15, %v1348_v15  ;;  %v1379_v33 = vrot.slane %v1348_v15, %v1361_v61 }
 0x576   :  { %v1389_v20 = vcombine.high %v1349_v16, %v1349_v16  ;;  %v1396_v9 = vrot.slane %v1349_v16, %v1361_v61  ;;  %v1406_v37 = vcombine.high %v1350_v17, %v1350_v17  ;;  %v1413_v62 = vrot.slane %v1350_v17, %v1361_v61 }
 0x577   :  { %v1369_v35 = vrot.slane %v1355_v2, %v1361_v61  ;;  %v1370_v21 = vcombine.high %v1362_v18, %v1362_v18  ;;  %v1922_v22 = vrot.slane %v1362_v18, 9  ;;  %v1386_v0 = vrot.slane %v1372_v19, %v1361_v61 }
 0x578   :  { %v1403_v23 = vrot.slane %v1389_v20, %v1361_v61  ;;  %v1404_v24 = vcombine.high %v1396_v9, %v1396_v9  ;;  %v1930_v5 = vrot.slane %v1396_v9, 9  ;;  %v1926_v25 = vrot.slane %v1379_v33, 9 }
 0x579   :  { %v1371_v55 = vcombine.high %v1369_v35, %v1369_v35  ;;  %v1923_v3 = vrot.slane %v1370_v21, 9  ;;  %v1924_v4 = vrot.slane %v1369_v35, 9  ;;  %v1420_v50 = vrot.slane %v1406_v37, %v1361_v61 }
 0x57a   :  { %v1405_v7 = vcombine.high %v1403_v23, %v1403_v23  ;;  %v1931_v26 = vrot.slane %v1404_v24, 9  ;;  %v1932_v27 = vrot.slane %v1403_v23, 9  ;;  %v1487_v28 = vmax.f32 %v1362_v18, %v1922_v22 }
 0x57b   :  { %v1488_v29 = vmax.f32 %v1370_v21, %v1923_v3  ;;  %v1489_v30 = vmax.f32 %v1369_v35, %v1924_v4  ;;  %v1934_v6 = vrot.slane %v1413_v62, 9  ;;  %v1495_v34 = vmax.f32 %v1396_v9, %v1930_v5 }
 0x57c   :  { %v1933_v32 = vrot.slane %v1405_v7, 9  ;;  %v1387_v36 = vcombine.high %v1379_v33, %v1379_v33  ;;  %v1496_v38 = vmax.f32 %v1404_v24, %v1931_v26  ;;  %v1497_v39 = vmax.f32 %v1403_v23, %v1932_v27 }
 0x57d   :  { %v1388_v41 = vcombine.high %v1386_v0, %v1386_v0  ;;  %v1925_v42 = vrot.slane %v1371_v55, 9  ;;  %v1538_v40 = vrot.slane %v1487_v28, %v2769_v1  ;;  %v1928_v43 = vrot.slane %v1386_v0, 9 }
 0x57e   :  { %v1927_v44 = vrot.slane %v1387_v36, 9  ;;  %v1491_v46 = vmax.f32 %v1379_v33, %v1926_v25  ;;  %v1542_v48 = vrot.slane %v1488_v29, %v2769_v1  ;;  %v1546_v8 = vrot.slane %v1489_v30, %v2769_v1 }
 0x57f   :  { %v1929_v45 = vrot.slane %v1388_v41, 9  ;;  %v1490_v47 = vmax.f32 %v1371_v55, %v1925_v42  ;;  %v1570_v49 = vrot.slane %v1495_v34, %v2769_v1  ;;  %v1493_v52 = vmax.f32 %v1386_v0, %v1928_v43 }
 0x580   :  { %v1492_v51 = vmax.f32 %v1387_v36, %v1927_v44  ;;  %v1421_v53 = vcombine.high %v1413_v62, %v1413_v62  ;;  %v1600_v56 = vsel %vm1599_vm10, %v1542_v48, %v1538_v40  ;;  %v1422_v57 = vcombine.high %v1420_v50, %v1420_v50 }
 0x581   :  { %v1494_v54 = vmax.f32 %v1388_v41, %v1929_v45  ;;  %v1550_v10 = vrot.slane %v1490_v47, %v2769_v1  ;;  %v1574_v58 = vrot.slane %v1496_v38, %v2769_v1  ;;  %v1554_v59 = vrot.slane %v1491_v46, %v2769_v1 }
 0x582   :  { %v1602_v11 = vsel %vm1601_vm11, %v1546_v8, %v1600_v56  ;;  %v1935_v60 = vrot.slane %v1421_v53, 9  ;;  %v1558_v61 = vrot.slane %v1492_v51, %v2769_v1  ;;  %v1936_v31 = vrot.slane %v1420_v50, 9 }
 0x583   :  { %v1604_v63 = vsel %vm1603_vm12, %v1550_v10, %v1602_v11  ;;  %v1937_v12 = vrot.slane %v1422_v57, 9  ;;  %v1562_v13 = vrot.slane %v1493_v52, %v2769_v1  ;;  %v1498_v15 = vmax.f32 %v1405_v7, %v1933_v32 }
 0x584   :  { %v1606_v14 = vsel %vm1605_vm13, %v1554_v59, %v1604_v63  ;;  %v1499_v16 = vmax.f32 %v1413_v62, %v1934_v6  ;;  %v1566_v17 = vrot.slane %v1494_v54, %v2769_v1  ;;  %v1500_v18 = vmax.f32 %v1421_v53, %v1935_v60 }
 0x585   :  { %v1608_v2 = vsel %vm1607_vm14, %v1558_v61, %v1606_v14  ;;  %v1578_v19 = vrot.slane %v1497_v39, %v2769_v1  ;;  %v1501_v20 = vmax.f32 %v1420_v50, %v1936_v31  ;;  %v1582_v9 = vrot.slane %v1498_v15, %v2769_v1 }
 0x586   :  { %v1610_v33 = vsel %vm1609_vm15, %v1562_v13, %v1608_v2  ;;  %v1502_v21 = vmax.f32 %v1422_v57, %v1937_v12  ;;  %v1613_v37 = vsel %vm1599_vm10, %v1574_v58, %v1570_v49  ;;  %v1586_v22 = vrot.slane %v1499_v16, %v2769_v1 }
 0x587   :  { %v1612_v35 = vsel %vm1611_vm1, %v1566_v17, %v1610_v33  ;;  %v1614_v0 = vsel %vm1601_vm11, %v1578_v19, %v1613_v37  ;;  %v1590_v23 = vrot.slane %v1500_v18, %v2769_v1  ;;  %v1594_v62 = vrot.slane %v1501_v20, %v2769_v1 }
 0x588   :  { %2279 = vmatprep.mubr.f32.mxu0 %v1612_v35  ;;  %2314 = vmatprep.mubr.f32.mxu1 %v1612_v35  ;;  %v1615_v24 = vsel %vm1603_vm12, %v1582_v9, %v1614_v0  ;;  %v1598_v3 = vrot.slane %v1502_v21, %v2769_v1 }
 0x589   :  { %v1616_v55 = vsel %vm1605_vm13, %v1586_v22, %v1615_v24 }
 0x58a   :  { %v1617_v4 = vsel %vm1607_vm14, %v1590_v23, %v1616_v55 }
 0x58b   :  { %v1618_v5 = vsel %vm1609_vm15, %v1594_v62, %v1617_v4 }
 0x58c   :  { %v1619_v7 = vsel %vm1611_vm1, %v1598_v3, %v1618_v5 }
 0x58d   :  { %2280 = vmatmul.mubr.f32.vlgmr.msra.gmra.mxu0 %v1619_v7  ;;  %2315 = vmatmul.mubr.f32.vlgmr.msra.gmra.mxu1 %v1619_v7 }
 0x64d   :  { %v2281_v25 = vpop.f32.mrf.mxu0  ;;  %v2316_v26 = vpop.f32.mrf.mxu1 }
 0x64e   :  { %v1789_v27 = vmax.f32 %v2281_v25, %v2316_v26 }
 0x64f   :  { %v1688_v50 = vpop.f32.mrf.mxu0  ;;  %v1779_v28 = vpop.f32.mrf.mxu1 }
 0x650   :  { %1791 = vst.msk [vmem:[#allocation3 + $0x8] sm:$0xff] %vm138_vm0, %v1789_v27  ;;  %v1788_v29 = vmax.f32 %v1688_v50, %v1779_v28 }
 0x652   :  { %1790 = vst.msk [vmem:[#allocation3] sm:$0xff] %vm138_vm0, %v1788_v29 }
 0x653   :  { %2378 = shalt.err (!%p2375_p4)
}
 0x654   :  { %s2393_s3 = smov 128   ;;  %s2394_s25 = smov 8  }
 0x655   :  { %1803 = dma.vmem_to_hbm [thread:$0]  %s1798_s8, 256, %s3047_s9, [#allocation4], %s2393_s3, %s2393_s3, %s2394_s25  }
 0x656   :  { %2387 = dma.done.wait [#allocation4], 256  }
 0x657   :  { %2388 = vsyncadd [#allocation4], 4294967040 }
 0x658   :  { %1807 = vsyncpa [#allocation4], 1 }

</bundles_post_ra>
